<compile_context>
chip_gen: v5e
topology: v5e:2x2
jax: 0.10.0
libtpu: 0.0.40
codegen_flags: <defaults>
</compile_context>

<pallas_src>
import functools

import jax
import jax.numpy as jnp
from jax import lax
from jax.experimental import pallas as pl
from jax.experimental.pallas import tpu as pltpu

LANE = 128


def _round_up(v, m):
    return (v + m - 1) // m * m


def _choose_agg_tiles(n):
    """Row tile tm, neighbor tile tk (tk grown more aggressively: A-stream
    dominates HBM bytes), and padded node count Np with tm | Np and tk | Np."""
    np0 = _round_up(n, LANE)
    if np0 >= 2048:
        tm, tk = 1024, 2048
    elif np0 >= 1024:
        tm, tk = 512, 1024
    elif np0 >= 512:
        tm, tk = 256, 512
    elif np0 >= 256:
        tm, tk = 128, 256
    else:
        tm, tk = 128, 128
    npad = _round_up(n, tk)   # tk is a multiple of tm -> tm | npad as well
    return tm, tk, npad


def _pad2(a, rows, cols, dtype):
    r, c = a.shape
    return jnp.pad(a, ((0, rows - r), (0, cols - c))).astype(dtype)


# ---------------------------------------------------------------------------
# Kernels
# ---------------------------------------------------------------------------
def _transform_kernel(x_ref, wlr_ref, b_ref, t_ref, s_ref, *, hp):
    """[t | s] = X @ [Wl | Wr] (single 2*Hp-wide matmul); s gets the bias.

    t (bf16) is the neighbor message fed to the aggregation; s (f32) is the
    self/root term lin_r(x) + b.
    """
    x = x_ref[...]
    ts = jnp.dot(x, wlr_ref[...], preferred_element_type=jnp.float32)
    t_ref[...] = ts[:, :hp].astype(t_ref.dtype)
    s_ref[...] = ts[:, hp:] + b_ref[...]


def _agg_transform_kernel(a_ref, t_ref, s_ref, invdeg_ref, wlr_ref, b_ref,
                          t_out_ref, s_out_ref, acc_ref, *, hp):
    """h = relu(inv_deg*(A@t) + s);  [t_out | s_out] = h @ [Wl2 | Wr2] (+b2)."""
    k = pl.program_id(1)

    @pl.when(k == 0)
    def _():
        acc_ref[...] = jnp.zeros_like(acc_ref)

    # A streamed as int8 from HBM; upcast on the VPU (hidden under DMA).
    a = a_ref[...].astype(jnp.bfloat16)
    acc_ref[...] += jnp.dot(a, t_ref[...], preferred_element_type=jnp.float32)

    @pl.when(k == pl.num_programs(1) - 1)
    def _():
        h = jnp.maximum(acc_ref[...] * invdeg_ref[...] + s_ref[...], 0.0)
        hb = h.astype(jnp.bfloat16)
        ts = jnp.dot(hb, wlr_ref[...], preferred_element_type=jnp.float32)
        t_out_ref[...] = ts[:, :hp].astype(t_out_ref.dtype)
        s_out_ref[...] = ts[:, hp:] + b_ref[...]


def _agg_head_kernel(a_ref, t_ref, s_ref, invdeg_ref, wo_ref, bo_ref,
                     out_ref, acc_ref, *, num_classes):
    """h = relu(inv_deg*(A@t) + s); out = log_softmax(h@Wo + bo) over valid lanes."""
    k = pl.program_id(1)

    @pl.when(k == 0)
    def _():
        acc_ref[...] = jnp.zeros_like(acc_ref)

    a = a_ref[...].astype(jnp.bfloat16)
    acc_ref[...] += jnp.dot(a, t_ref[...], preferred_element_type=jnp.float32)

    @pl.when(k == pl.num_programs(1) - 1)
    def _():
        h = jnp.maximum(acc_ref[...] * invdeg_ref[...] + s_ref[...], 0.0)
        logits = jnp.dot(h.astype(jnp.bfloat16), wo_ref[...],
                         preferred_element_type=jnp.float32) + bo_ref[...]
        # mask lane padding (C .. Cp) so it does not pollute the softmax
        cols = lax.broadcasted_iota(jnp.int32, logits.shape, 1)
        logits = jnp.where(cols < num_classes, logits, -1e30)
        m = jnp.max(logits, axis=1, keepdims=True)
        e = jnp.exp(logits - m)
        lse = m + jnp.log(jnp.sum(e, axis=1, keepdims=True))
        out_ref[...] = logits - lse


# ---------------------------------------------------------------------------
# Forward wrapper
# ---------------------------------------------------------------------------
@jax.jit
def graphsage_forward(a_counts, inv_deg, x, params):
    """a_counts: [N,N] unnormalized in-edge counts; inv_deg: [N,1]; x: [N,F]."""
    N, F = x.shape
    H = params["wl1"].shape[1]
    C = params["wo"].shape[1]

    tm, tk, Np = _choose_agg_tiles(N)
    Fp = _round_up(F, LANE)
    Hp = _round_up(H, LANE)
    Cp = _round_up(C, LANE)
    grid_rows = Np // tm
    grid2 = (grid_rows, Np // tk)

    bf = jnp.bfloat16
    xp = _pad2(x, Np, Fp, bf)
    # int8 adjacency: exact for edge counts <= 127 (0/1 for simple graphs);
    # halves the dominant HBM stream of the aggregation calls.
    ap = _pad2(a_counts, Np, Np, jnp.int8)
    idp = _pad2(inv_deg, Np, 1, jnp.float32)

    # Fused [Wl | Wr] weights fill the 256-wide bf16 MXU on v6e/v7x.
    wlr1 = jnp.concatenate(
        [_pad2(params["wl1"], Fp, Hp, bf), _pad2(params["wr1"], Fp, Hp, bf)], axis=1)
    b1 = _pad2(params["b1"], 1, Hp, jnp.float32)
    wlr2 = jnp.concatenate(
        [_pad2(params["wl2"], Hp, Hp, bf), _pad2(params["wr2"], Hp, Hp, bf)], axis=1)
    b2 = _pad2(params["b2"], 1, Hp, jnp.float32)
    wo = _pad2(params["wo"], Hp, Cp, bf)
    bo = _pad2(params["bo"], 1, Cp, jnp.float32)

    # ---- layer-1 feature transform (row-tiled, megacore-parallel) ----
    t1, s1 = pl.pallas_call(
        functools.partial(_transform_kernel, hp=Hp),
        out_shape=(jax.ShapeDtypeStruct((Np, Hp), bf),
                   jax.ShapeDtypeStruct((Np, Hp), jnp.float32)),
        grid=(grid_rows,),
        in_specs=[pl.BlockSpec((tm, Fp), lambda i: (i, 0)),
                  pl.BlockSpec((Fp, 2 * Hp), lambda i: (0, 0)),
                  pl.BlockSpec((1, Hp), lambda i: (0, 0))],
        out_specs=(pl.BlockSpec((tm, Hp), lambda i: (i, 0)),
                   pl.BlockSpec((tm, Hp), lambda i: (i, 0))),
        compiler_params=pltpu.CompilerParams(
            dimension_semantics=("parallel",)),
    )(xp, wlr1, b1)

    # ---- layer-1 aggregation + ReLU, fused with layer-2 feature transform ----
    t2, s2 = pl.pallas_call(
        functools.partial(_agg_transform_kernel, hp=Hp),
        out_shape=(jax.ShapeDtypeStruct((Np, Hp), bf),
                   jax.ShapeDtypeStruct((Np, Hp), jnp.float32)),
        grid=grid2,
        in_specs=[pl.BlockSpec((tm, tk), lambda i, k: (i, k)),
                  pl.BlockSpec((tk, Hp), lambda i, k: (k, 0)),
                  pl.BlockSpec((tm, Hp), lambda i, k: (i, 0)),
                  pl.BlockSpec((tm, 1), lambda i, k: (i, 0)),
                  pl.BlockSpec((Hp, 2 * Hp), lambda i, k: (0, 0)),
                  pl.BlockSpec((1, Hp), lambda i, k: (0, 0))],
        out_specs=(pl.BlockSpec((tm, Hp), lambda i, k: (i, 0)),
                   pl.BlockSpec((tm, Hp), lambda i, k: (i, 0))),
        scratch_shapes=[pltpu.VMEM((tm, Hp), jnp.float32)],
        compiler_params=pltpu.CompilerParams(
            dimension_semantics=("parallel", "arbitrary")),
    )(ap, t1, s1, idp, wlr2, b2)

    # ---- layer-2 aggregation + ReLU, fused with output Linear + log_softmax ----
    # TODO(synk): on v5e/v6e (128 MiB VMEM) and small graphs, A row-stripes could
    # be pinned on-chip and reused across both aggregation passes to halve the
    # A stream; needs a restructured single pallas_call with persistent scratch.
    out_padded = pl.pallas_call(
        functools.partial(_agg_head_kernel, num_classes=C),
        out_shape=jax.ShapeDtypeStruct((Np, Cp), jnp.float32),
        grid=grid2,
        in_specs=[pl.BlockSpec((tm, tk), lambda i, k: (i, k)),
                  pl.BlockSpec((tk, Hp), lambda i, k: (k, 0)),
                  pl.BlockSpec((tm, Hp), lambda i, k: (i, 0)),
                  pl.BlockSpec((tm, 1), lambda i, k: (i, 0)),
                  pl.BlockSpec((Hp, Cp), lambda i, k: (0, 0)),
                  pl.BlockSpec((1, Cp), lambda i, k: (0, 0))],
        out_specs=pl.BlockSpec((tm, Cp), lambda i, k: (i, 0)),
        scratch_shapes=[pltpu.VMEM((tm, Hp), jnp.float32)],
        compiler_params=pltpu.CompilerParams(
            dimension_semantics=("parallel", "arbitrary")),
    )(ap, t2, s2, idp, wo, bo)

    return out_padded[:N, :C]


# ---------------------------------------------------------------------------
# Graph / parameter construction
# ---------------------------------------------------------------------------
def build_adjacency(edge_index, num_nodes):
    """Dense UNnormalized in-edge counts + inverse degree from edge_index [2, E]."""
    # TODO(synk): for large sparse graphs, replace dense A tiles with a CSR/gather
    # aggregation driven by PrefetchScalarGridSpec + manual make_async_copy.
    src, dst = edge_index[0], edge_index[1]
    counts = jnp.zeros((num_nodes, num_nodes), jnp.float32).at[dst, src].add(1.0)
    deg = counts.sum(axis=1, keepdims=True)
    inv_deg = 1.0 / jnp.maximum(deg, 1.0)
    return counts, inv_deg


def init_params(key, num_features, hidden, num_classes):
    ks = jax.random.split(key, 8)

    def glorot(k, shape):
        fan_in, fan_out = shape
        lim = (6.0 / (fan_in + fan_out)) ** 0.5
        return jax.random.uniform(k, shape, jnp.float32, -lim, lim)

    return {
        # stored as [in, out] (transposed vs torch's [out, in])
        "wl1": glorot(ks[0], (num_features, hidden)),
        "wr1": glorot(ks[1], (num_features, hidden)),
        "b1":  jnp.zeros((1, hidden), jnp.float32),
        "wl2": glorot(ks[2], (hidden, hidden)),
        "wr2": glorot(ks[3], (hidden, hidden)),
        "b2":  jnp.zeros((1, hidden), jnp.float32),
        "wo":  glorot(ks[4], (hidden, num_classes)),
        "bo":  jax.random.uniform(ks[5], (1, num_classes), jnp.float32, -0.1, 0.1),
    }


def _reference_forward(a_counts, inv_deg, x, params):
    """Pure-JAX reference mirroring the kernel's bf16 cast points."""
    up = lambda v: v.astype(jnp.bfloat16).astype(jnp.float32)
    a = up(a_counts)            # 0/1 counts: exact in bf16 / int8
    xb = up(x)
    t1 = up(jnp.dot(xb, up(params["wl1"])))
    s1 = jnp.dot(xb, up(params["wr1"])) + params["b1"]
    h1 = jnp.maximum(jnp.dot(a, t1) * inv_deg + s1, 0.0)
    h1b = up(h1)
    t2 = up(jnp.dot(h1b, up(params["wl2"])))
    s2 = jnp.dot(h1b, up(params["wr2"])) + params["b2"]
    h2 = jnp.maximum(jnp.dot(a, t2) * inv_deg + s2, 0.0)
    logits = jnp.dot(up(h2), up(params["wo"])) + params["bo"]
    return jax.nn.log_softmax(logits, axis=1)


if __name__ == "__main__":
    key = jax.random.PRNGKey(0)
    N, F, H, C = 16, 8, 32, 4

    k_x, k_p = jax.random.split(key)
    x = jax.random.normal(k_x, (N, F), jnp.float32)

    # deterministic small graph: ring edges in both directions + self loops
    src = jnp.concatenate([jnp.arange(N), jnp.arange(N), jnp.arange(N)])
    dst = jnp.concatenate([(jnp.arange(N) + 1) % N, (jnp.arange(N) - 1) % N, jnp.arange(N)])
    edge_index = jnp.stack([src, dst]).astype(jnp.int32)   # [2, E]

    a_counts, inv_deg = build_adjacency(edge_index, N)
    params = init_params(k_p, F, H, C)

    out = graphsage_forward(a_counts, inv_deg, x, params)
    out = jax.block_until_ready(out)

    assert out.shape == (N, C)
    # log_softmax rows must sum (in prob space) to ~1
    row_prob = jnp.exp(out).sum(axis=1)
    assert bool(jnp.all(jnp.abs(row_prob - 1.0) < 1e-4))
    # compare against a pure-JAX reference with matching cast points
    ref = _reference_forward(a_counts, inv_deg, x, params)
    max_err = float(jnp.max(jnp.abs(out - ref)))
    assert max_err < 5e-2, f"mismatch vs reference: {max_err}"

    print("KERNEL_OK")
</pallas_src>

<mosaic_0001>
module attributes {stable_mosaic.version = 11 : i64} {
  func.func @_transform_kernel(%arg0: i32, %arg1: memref<128x128xbf16, #tpu.memory_space<vmem>>, %arg2: memref<128x256xbf16, #tpu.memory_space<vmem>>, %arg3: memref<1x128xf32, #tpu.memory_space<vmem>>, %arg4: memref<128x128xbf16, #tpu.memory_space<vmem>>, %arg5: memref<128x128xf32, #tpu.memory_space<vmem>>) attributes {dimension_semantics = [#tpu.dimension_semantics<parallel>], iteration_bounds = array<i64: 1>, scalar_prefetch = 0 : i64, scratch_operands = 0 : i64, tpu.core_type = #tpu.core_type<tc>, window_params = [{transform_indices = @transform_0, window_bounds = array<i64: 128, 128>}, {pipeline_mode = #tpu.pipeline_mode<synchronous>, transform_indices = @transform_1, window_bounds = array<i64: 128, 256>}, {pipeline_mode = #tpu.pipeline_mode<synchronous>, transform_indices = @transform_2, window_bounds = array<i64: 1, 128>}, {transform_indices = @transform_3, window_bounds = array<i64: 128, 128>}, {transform_indices = @transform_4, window_bounds = array<i64: 128, 128>}]} {
    %c0 = arith.constant 0 : index
    %c0_0 = arith.constant 0 : index
    %0 = vector.load %arg1[%c0, %c0_0] : memref<128x128xbf16, #tpu.memory_space<vmem>>, vector<128x128xbf16>
    %c0_1 = arith.constant 0 : index
    %c0_2 = arith.constant 0 : index
    %1 = vector.load %arg2[%c0_1, %c0_2] : memref<128x256xbf16, #tpu.memory_space<vmem>>, vector<128x256xbf16>
    %cst = arith.constant dense<0.000000e+00> : vector<128x256xf32>
    %2 = tpu.matmul %0, %1, %cst {dimension_numbers = #tpu.dot_dimension_numbers<[1], [0], [0], [1], [0, 0, 1, 1], [], []>} : vector<128x128xbf16>, vector<128x256xbf16>, vector<128x256xf32> -> vector<128x256xf32>
    %3 = vector.extract_strided_slice %2 {offsets = [0, 0], sizes = [128, 128], strides = [1, 1]} : vector<128x256xf32> to vector<128x128xf32>
    %4 = arith.truncf %3 : vector<128x128xf32> to vector<128x128xbf16>
    %c0_3 = arith.constant 0 : index
    %c0_4 = arith.constant 0 : index
    %5 = vector.load %arg4[%c0_3, %c0_4] : memref<128x128xbf16, #tpu.memory_space<vmem>>, vector<128x128xbf16>
    tpu.vector_store %arg4[%c0_3, %c0_4], %4 {strides = array<i32>} : memref<128x128xbf16, #tpu.memory_space<vmem>>, vector<128x128xbf16>,
    %6 = vector.extract_strided_slice %2 {offsets = [0, 128], sizes = [128, 128], strides = [1, 1]} : vector<128x256xf32> to vector<128x128xf32>
    %c0_5 = arith.constant 0 : index
    %c0_6 = arith.constant 0 : index
    %7 = vector.load %arg3[%c0_5, %c0_6] : memref<1x128xf32, #tpu.memory_space<vmem>>, vector<1x128xf32>
    %8 = vector.broadcast %7 : vector<1x128xf32> to vector<128x128xf32>
    %9 = arith.addf %6, %8 : vector<128x128xf32>
    %c0_7 = arith.constant 0 : index
    %c0_8 = arith.constant 0 : index
    %10 = vector.load %arg5[%c0_7, %c0_8] : memref<128x128xf32, #tpu.memory_space<vmem>>, vector<128x128xf32>
    tpu.vector_store %arg5[%c0_7, %c0_8], %9 {strides = array<i32>} : memref<128x128xf32, #tpu.memory_space<vmem>>, vector<128x128xf32>,
    return
  }
  func.func @transform_0(%arg0: i32) -> (i32, i32) {
    %c0_i32 = arith.constant 0 : i32
    %c0_i32_0 = arith.constant 0 : i32
    return %arg0, %c0_i32 : i32, i32
  }
  func.func @transform_1(%arg0: i32) -> (i32, i32) {
    %c0_i32 = arith.constant 0 : i32
    %c0_i32_0 = arith.constant 0 : i32
    %c0_i32_1 = arith.constant 0 : i32
    return %c0_i32, %c0_i32_0 : i32, i32
  }
  func.func @transform_2(%arg0: i32) -> (i32, i32) {
    %c0_i32 = arith.constant 0 : i32
    %c0_i32_0 = arith.constant 0 : i32
    %c0_i32_1 = arith.constant 0 : i32
    return %c0_i32, %c0_i32_0 : i32, i32
  }
  func.func @transform_3(%arg0: i32) -> (i32, i32) {
    %c0_i32 = arith.constant 0 : i32
    %c0_i32_0 = arith.constant 0 : i32
    return %arg0, %c0_i32 : i32, i32
  }
  func.func @transform_4(%arg0: i32) -> (i32, i32) {
    %c0_i32 = arith.constant 0 : i32
    %c0_i32_0 = arith.constant 0 : i32
    return %arg0, %c0_i32 : i32, i32
  }
}

module attributes {stable_mosaic.version = 11 : i64} {
  func.func @_agg_transform_kernel(%arg0: i32, %arg1: i32, %arg2: memref<128x128xi8, #tpu.memory_space<vmem>>, %arg3: memref<128x128xbf16, #tpu.memory_space<vmem>>, %arg4: memref<128x128xf32, #tpu.memory_space<vmem>>, %arg5: memref<128x1xf32, #tpu.memory_space<vmem>>, %arg6: memref<128x256xbf16, #tpu.memory_space<vmem>>, %arg7: memref<1x128xf32, #tpu.memory_space<vmem>>, %arg8: memref<128x128xbf16, #tpu.memory_space<vmem>>, %arg9: memref<128x128xf32, #tpu.memory_space<vmem>>, %arg10: memref<128x128xf32, #tpu.memory_space<vmem>>) attributes {dimension_semantics = [#tpu.dimension_semantics<parallel>, #tpu.dimension_semantics<arbitrary>], iteration_bounds = array<i64: 1, 1>, scalar_prefetch = 0 : i64, scratch_operands = 1 : i64, tpu.core_type = #tpu.core_type<tc>, window_params = [{transform_indices = @transform_0, window_bounds = array<i64: 128, 128>}, {transform_indices = @transform_1, window_bounds = array<i64: 128, 128>}, {transform_indices = @transform_2, window_bounds = array<i64: 128, 128>}, {transform_indices = @transform_3, window_bounds = array<i64: 128, 1>}, {pipeline_mode = #tpu.pipeline_mode<synchronous>, transform_indices = @transform_4, window_bounds = array<i64: 128, 256>}, {pipeline_mode = #tpu.pipeline_mode<synchronous>, transform_indices = @transform_5, window_bounds = array<i64: 1, 128>}, {transform_indices = @transform_6, window_bounds = array<i64: 128, 128>}, {transform_indices = @transform_7, window_bounds = array<i64: 128, 128>}]} {
    %c0_i32 = arith.constant 0 : i32
    %0 = arith.cmpi eq, %arg1, %c0_i32 : i32
    %1 = arith.extui %0 : i1 to i32
    %c0_i32_0 = arith.constant 0 : i32
    %2 = arith.cmpi ne, %1, %c0_i32_0 : i32
    scf.if %2 {
      %cst_10 = arith.constant 0.000000e+00 : f32
      %13 = vector.broadcast %cst_10 : f32 to vector<128x128xf32>
      %c0_11 = arith.constant 0 : index
      %c0_12 = arith.constant 0 : index
      %14 = vector.load %arg10[%c0_11, %c0_12] : memref<128x128xf32, #tpu.memory_space<vmem>>, vector<128x128xf32>
      tpu.vector_store %arg10[%c0_11, %c0_12], %13 {strides = array<i32>} : memref<128x128xf32, #tpu.memory_space<vmem>>, vector<128x128xf32>,
    } else {
    }
    %c0 = arith.constant 0 : index
    %c0_1 = arith.constant 0 : index
    %3 = vector.load %arg2[%c0, %c0_1] : memref<128x128xi8, #tpu.memory_space<vmem>>, vector<128x128xi8>
    %4 = arith.sitofp %3 : vector<128x128xi8> to vector<128x128xbf16>
    %c0_2 = arith.constant 0 : index
    %c0_3 = arith.constant 0 : index
    %5 = vector.load %arg10[%c0_2, %c0_3] : memref<128x128xf32, #tpu.memory_space<vmem>>, vector<128x128xf32>
    %c0_4 = arith.constant 0 : index
    %c0_5 = arith.constant 0 : index
    %6 = vector.load %arg3[%c0_4, %c0_5] : memref<128x128xbf16, #tpu.memory_space<vmem>>, vector<128x128xbf16>
    %cst = arith.constant dense<0.000000e+00> : vector<128x128xf32>
    %7 = tpu.matmul %4, %6, %cst {dimension_numbers = #tpu.dot_dimension_numbers<[1], [0], [0], [1], [0, 0, 1, 1], [], []>} : vector<128x128xbf16>, vector<128x128xbf16>, vector<128x128xf32> -> vector<128x128xf32>
    %8 = arith.addf %5, %7 : vector<128x128xf32>
    %c0_6 = arith.constant 0 : index
    %c0_7 = arith.constant 0 : index
    %9 = vector.load %arg10[%c0_6, %c0_7] : memref<128x128xf32, #tpu.memory_space<vmem>>, vector<128x128xf32>
    tpu.vector_store %arg10[%c0_6, %c0_7], %8 {strides = array<i32>} : memref<128x128xf32, #tpu.memory_space<vmem>>, vector<128x128xf32>,
    %c0_i32_8 = arith.constant 0 : i32
    %10 = arith.cmpi eq, %arg1, %c0_i32_8 : i32
    %11 = arith.extui %10 : i1 to i32
    %c0_i32_9 = arith.constant 0 : i32
    %12 = arith.cmpi ne, %11, %c0_i32_9 : i32
    scf.if %12 {
      %c0_10 = arith.constant 0 : index
      %c0_11 = arith.constant 0 : index
      %13 = vector.load %arg10[%c0_10, %c0_11] : memref<128x128xf32, #tpu.memory_space<vmem>>, vector<128x128xf32>
      %c0_12 = arith.constant 0 : index
      %c0_13 = arith.constant 0 : index
      %14 = vector.load %arg5[%c0_12, %c0_13] : memref<128x1xf32, #tpu.memory_space<vmem>>, vector<128x1xf32>
      %15 = vector.broadcast %14 : vector<128x1xf32> to vector<128x128xf32>
      %16 = arith.mulf %13, %15 : vector<128x128xf32>
      %c0_14 = arith.constant 0 : index
      %c0_15 = arith.constant 0 : index
      %17 = vector.load %arg4[%c0_14, %c0_15] : memref<128x128xf32, #tpu.memory_space<vmem>>, vector<128x128xf32>
      %18 = arith.addf %16, %17 : vector<128x128xf32>
      %cst_16 = arith.constant 0.000000e+00 : f32
      %19 = vector.broadcast %cst_16 : f32 to vector<128x128xf32>
      %20 = arith.maximumf %18, %19 : vector<128x128xf32>
      %21 = arith.truncf %20 : vector<128x128xf32> to vector<128x128xbf16>
      %c0_17 = arith.constant 0 : index
      %c0_18 = arith.constant 0 : index
      %22 = vector.load %arg6[%c0_17, %c0_18] : memref<128x256xbf16, #tpu.memory_space<vmem>>, vector<128x256xbf16>
      %cst_19 = arith.constant dense<0.000000e+00> : vector<128x256xf32>
      %23 = tpu.matmul %21, %22, %cst_19 {dimension_numbers = #tpu.dot_dimension_numbers<[1], [0], [0], [1], [0, 0, 1, 1], [], []>} : vector<128x128xbf16>, vector<128x256xbf16>, vector<128x256xf32> -> vector<128x256xf32>
      %24 = vector.extract_strided_slice %23 {offsets = [0, 0], sizes = [128, 128], strides = [1, 1]} : vector<128x256xf32> to vector<128x128xf32>
      %25 = arith.truncf %24 : vector<128x128xf32> to vector<128x128xbf16>
      %c0_20 = arith.constant 0 : index
      %c0_21 = arith.constant 0 : index
      %26 = vector.load %arg8[%c0_20, %c0_21] : memref<128x128xbf16, #tpu.memory_space<vmem>>, vector<128x128xbf16>
      tpu.vector_store %arg8[%c0_20, %c0_21], %25 {strides = array<i32>} : memref<128x128xbf16, #tpu.memory_space<vmem>>, vector<128x128xbf16>,
      %27 = vector.extract_strided_slice %23 {offsets = [0, 128], sizes = [128, 128], strides = [1, 1]} : vector<128x256xf32> to vector<128x128xf32>
      %c0_22 = arith.constant 0 : index
      %c0_23 = arith.constant 0 : index
      %28 = vector.load %arg7[%c0_22, %c0_23] : memref<1x128xf32, #tpu.memory_space<vmem>>, vector<1x128xf32>
      %29 = vector.broadcast %28 : vector<1x128xf32> to vector<128x128xf32>
      %30 = arith.addf %27, %29 : vector<128x128xf32>
      %c0_24 = arith.constant 0 : index
      %c0_25 = arith.constant 0 : index
      %31 = vector.load %arg9[%c0_24, %c0_25] : memref<128x128xf32, #tpu.memory_space<vmem>>, vector<128x128xf32>
      tpu.vector_store %arg9[%c0_24, %c0_25], %30 {strides = array<i32>} : memref<128x128xf32, #tpu.memory_space<vmem>>, vector<128x128xf32>,
    } else {
    }
    return
  }
  func.func @transform_0(%arg0: i32, %arg1: i32) -> (i32, i32) {
    %c0_i32 = arith.constant 0 : i32
    return %arg0, %arg1 : i32, i32
  }
  func.func @transform_1(%arg0: i32, %arg1: i32) -> (i32, i32) {
    %c0_i32 = arith.constant 0 : i32
    %c0_i32_0 = arith.constant 0 : i32
    return %arg1, %c0_i32 : i32, i32
  }
  func.func @transform_2(%arg0: i32, %arg1: i32) -> (i32, i32) {
    %c0_i32 = arith.constant 0 : i32
    %c0_i32_0 = arith.constant 0 : i32
    return %arg0, %c0_i32 : i32, i32
  }
  func.func @transform_3(%arg0: i32, %arg1: i32) -> (i32, i32) {
    %c0_i32 = arith.constant 0 : i32
    %c0_i32_0 = arith.constant 0 : i32
    return %arg0, %c0_i32 : i32, i32
  }
  func.func @transform_4(%arg0: i32, %arg1: i32) -> (i32, i32) {
    %c0_i32 = arith.constant 0 : i32
    %c0_i32_0 = arith.constant 0 : i32
    %c0_i32_1 = arith.constant 0 : i32
    return %c0_i32, %c0_i32_0 : i32, i32
  }
  func.func @transform_5(%arg0: i32, %arg1: i32) -> (i32, i32) {
    %c0_i32 = arith.constant 0 : i32
    %c0_i32_0 = arith.constant 0 : i32
    %c0_i32_1 = arith.constant 0 : i32
    return %c0_i32, %c0_i32_0 : i32, i32
  }
  func.func @transform_6(%arg0: i32, %arg1: i32) -> (i32, i32) {
    %c0_i32 = arith.constant 0 : i32
    %c0_i32_0 = arith.constant 0 : i32
    return %arg0, %c0_i32 : i32, i32
  }
  func.func @transform_7(%arg0: i32, %arg1: i32) -> (i32, i32) {
    %c0_i32 = arith.constant 0 : i32
    %c0_i32_0 = arith.constant 0 : i32
    return %arg0, %c0_i32 : i32, i32
  }
}

module attributes {stable_mosaic.version = 11 : i64} {
  func.func @_agg_head_kernel(%arg0: i32, %arg1: i32, %arg2: memref<128x128xi8, #tpu.memory_space<vmem>>, %arg3: memref<128x128xbf16, #tpu.memory_space<vmem>>, %arg4: memref<128x128xf32, #tpu.memory_space<vmem>>, %arg5: memref<128x1xf32, #tpu.memory_space<vmem>>, %arg6: memref<128x128xbf16, #tpu.memory_space<vmem>>, %arg7: memref<1x128xf32, #tpu.memory_space<vmem>>, %arg8: memref<128x128xf32, #tpu.memory_space<vmem>>, %arg9: memref<128x128xf32, #tpu.memory_space<vmem>>) attributes {dimension_semantics = [#tpu.dimension_semantics<parallel>, #tpu.dimension_semantics<arbitrary>], iteration_bounds = array<i64: 1, 1>, scalar_prefetch = 0 : i64, scratch_operands = 1 : i64, tpu.core_type = #tpu.core_type<tc>, window_params = [{transform_indices = @transform_0, window_bounds = array<i64: 128, 128>}, {transform_indices = @transform_1, window_bounds = array<i64: 128, 128>}, {transform_indices = @transform_2, window_bounds = array<i64: 128, 128>}, {transform_indices = @transform_3, window_bounds = array<i64: 128, 1>}, {pipeline_mode = #tpu.pipeline_mode<synchronous>, transform_indices = @transform_4, window_bounds = array<i64: 128, 128>}, {pipeline_mode = #tpu.pipeline_mode<synchronous>, transform_indices = @transform_5, window_bounds = array<i64: 1, 128>}, {transform_indices = @transform_6, window_bounds = array<i64: 128, 128>}]} {
    %c0_i32 = arith.constant 0 : i32
    %0 = arith.cmpi eq, %arg1, %c0_i32 : i32
    %1 = arith.extui %0 : i1 to i32
    %c0_i32_0 = arith.constant 0 : i32
    %2 = arith.cmpi ne, %1, %c0_i32_0 : i32
    scf.if %2 {
      %cst_10 = arith.constant 0.000000e+00 : f32
      %13 = vector.broadcast %cst_10 : f32 to vector<128x128xf32>
      %c0_11 = arith.constant 0 : index
      %c0_12 = arith.constant 0 : index
      %14 = vector.load %arg9[%c0_11, %c0_12] : memref<128x128xf32, #tpu.memory_space<vmem>>, vector<128x128xf32>
      tpu.vector_store %arg9[%c0_11, %c0_12], %13 {strides = array<i32>} : memref<128x128xf32, #tpu.memory_space<vmem>>, vector<128x128xf32>,
    } else {
    }
    %c0 = arith.constant 0 : index
    %c0_1 = arith.constant 0 : index
    %3 = vector.load %arg2[%c0, %c0_1] : memref<128x128xi8, #tpu.memory_space<vmem>>, vector<128x128xi8>
    %4 = arith.sitofp %3 : vector<128x128xi8> to vector<128x128xbf16>
    %c0_2 = arith.constant 0 : index
    %c0_3 = arith.constant 0 : index
    %5 = vector.load %arg9[%c0_2, %c0_3] : memref<128x128xf32, #tpu.memory_space<vmem>>, vector<128x128xf32>
    %c0_4 = arith.constant 0 : index
    %c0_5 = arith.constant 0 : index
    %6 = vector.load %arg3[%c0_4, %c0_5] : memref<128x128xbf16, #tpu.memory_space<vmem>>, vector<128x128xbf16>
    %cst = arith.constant dense<0.000000e+00> : vector<128x128xf32>
    %7 = tpu.matmul %4, %6, %cst {dimension_numbers = #tpu.dot_dimension_numbers<[1], [0], [0], [1], [0, 0, 1, 1], [], []>} : vector<128x128xbf16>, vector<128x128xbf16>, vector<128x128xf32> -> vector<128x128xf32>
    %8 = arith.addf %5, %7 : vector<128x128xf32>
    %c0_6 = arith.constant 0 : index
    %c0_7 = arith.constant 0 : index
    %9 = vector.load %arg9[%c0_6, %c0_7] : memref<128x128xf32, #tpu.memory_space<vmem>>, vector<128x128xf32>
    tpu.vector_store %arg9[%c0_6, %c0_7], %8 {strides = array<i32>} : memref<128x128xf32, #tpu.memory_space<vmem>>, vector<128x128xf32>,
    %c0_i32_8 = arith.constant 0 : i32
    %10 = arith.cmpi eq, %arg1, %c0_i32_8 : i32
    %11 = arith.extui %10 : i1 to i32
    %c0_i32_9 = arith.constant 0 : i32
    %12 = arith.cmpi ne, %11, %c0_i32_9 : i32
    scf.if %12 {
      %c0_10 = arith.constant 0 : index
      %c0_11 = arith.constant 0 : index
      %13 = vector.load %arg9[%c0_10, %c0_11] : memref<128x128xf32, #tpu.memory_space<vmem>>, vector<128x128xf32>
      %c0_12 = arith.constant 0 : index
      %c0_13 = arith.constant 0 : index
      %14 = vector.load %arg5[%c0_12, %c0_13] : memref<128x1xf32, #tpu.memory_space<vmem>>, vector<128x1xf32>
      %15 = vector.broadcast %14 : vector<128x1xf32> to vector<128x128xf32>
      %16 = arith.mulf %13, %15 : vector<128x128xf32>
      %c0_14 = arith.constant 0 : index
      %c0_15 = arith.constant 0 : index
      %17 = vector.load %arg4[%c0_14, %c0_15] : memref<128x128xf32, #tpu.memory_space<vmem>>, vector<128x128xf32>
      %18 = arith.addf %16, %17 : vector<128x128xf32>
      %cst_16 = arith.constant 0.000000e+00 : f32
      %19 = vector.broadcast %cst_16 : f32 to vector<128x128xf32>
      %20 = arith.maximumf %18, %19 : vector<128x128xf32>
      %21 = arith.truncf %20 : vector<128x128xf32> to vector<128x128xbf16>
      %c0_17 = arith.constant 0 : index
      %c0_18 = arith.constant 0 : index
      %22 = vector.load %arg6[%c0_17, %c0_18] : memref<128x128xbf16, #tpu.memory_space<vmem>>, vector<128x128xbf16>
      %cst_19 = arith.constant dense<0.000000e+00> : vector<128x128xf32>
      %23 = tpu.matmul %21, %22, %cst_19 {dimension_numbers = #tpu.dot_dimension_numbers<[1], [0], [0], [1], [0, 0, 1, 1], [], []>} : vector<128x128xbf16>, vector<128x128xbf16>, vector<128x128xf32> -> vector<128x128xf32>
      %c0_20 = arith.constant 0 : index
      %c0_21 = arith.constant 0 : index
      %24 = vector.load %arg7[%c0_20, %c0_21] : memref<1x128xf32, #tpu.memory_space<vmem>>, vector<1x128xf32>
      %25 = vector.broadcast %24 : vector<1x128xf32> to vector<128x128xf32>
      %26 = arith.addf %23, %25 : vector<128x128xf32>
      %27 = tpu.iota {dimensions = array<i32: 1>} : vector<128x128xi32>
      %c4_i32 = arith.constant 4 : i32
      %28 = vector.broadcast %c4_i32 : i32 to vector<128x128xi32>
      %29 = arith.cmpi slt, %27, %28 : vector<128x128xi32>
      %cst_22 = arith.constant -1.000000e+30 : f32
      %30 = vector.broadcast %cst_22 : f32 to vector<128x128xf32>
      %31 = arith.select %29, %26, %30 : vector<128x128xi1>, vector<128x128xf32>
      %cst_23 = arith.constant dense<0xFF800000> : vector<128xf32>
      %32 = vector.multi_reduction <maximumf>, %31, %cst_23 [1] : vector<128x128xf32> to vector<128xf32>
      %33 = vector.shape_cast %32 : vector<128xf32> to vector<128x1xf32>
      %34 = vector.broadcast %33 : vector<128x1xf32> to vector<128x128xf32>
      %35 = arith.subf %31, %34 : vector<128x128xf32>
      %36 = math.exp %35 : vector<128x128xf32>
      %cst_24 = arith.constant dense<0.000000e+00> : vector<128xf32>
      %37 = vector.multi_reduction <add>, %36, %cst_24 [1] : vector<128x128xf32> to vector<128xf32>
      %38 = vector.shape_cast %37 : vector<128xf32> to vector<128x1xf32>
      %39 = math.log %38 : vector<128x1xf32>
      %40 = arith.addf %33, %39 : vector<128x1xf32>
      %41 = vector.broadcast %40 : vector<128x1xf32> to vector<128x128xf32>
      %42 = arith.subf %31, %41 : vector<128x128xf32>
      %c0_25 = arith.constant 0 : index
      %c0_26 = arith.constant 0 : index
      %43 = vector.load %arg8[%c0_25, %c0_26] : memref<128x128xf32, #tpu.memory_space<vmem>>, vector<128x128xf32>
      tpu.vector_store %arg8[%c0_25, %c0_26], %42 {strides = array<i32>} : memref<128x128xf32, #tpu.memory_space<vmem>>, vector<128x128xf32>,
    } else {
    }
    return
  }
  func.func @transform_0(%arg0: i32, %arg1: i32) -> (i32, i32) {
    %c0_i32 = arith.constant 0 : i32
    return %arg0, %arg1 : i32, i32
  }
  func.func @transform_1(%arg0: i32, %arg1: i32) -> (i32, i32) {
    %c0_i32 = arith.constant 0 : i32
    %c0_i32_0 = arith.constant 0 : i32
    return %arg1, %c0_i32 : i32, i32
  }
  func.func @transform_2(%arg0: i32, %arg1: i32) -> (i32, i32) {
    %c0_i32 = arith.constant 0 : i32
    %c0_i32_0 = arith.constant 0 : i32
    return %arg0, %c0_i32 : i32, i32
  }
  func.func @transform_3(%arg0: i32, %arg1: i32) -> (i32, i32) {
    %c0_i32 = arith.constant 0 : i32
    %c0_i32_0 = arith.constant 0 : i32
    return %arg0, %c0_i32 : i32, i32
  }
  func.func @transform_4(%arg0: i32, %arg1: i32) -> (i32, i32) {
    %c0_i32 = arith.constant 0 : i32
    %c0_i32_0 = arith.constant 0 : i32
    %c0_i32_1 = arith.constant 0 : i32
    return %c0_i32, %c0_i32_0 : i32, i32
  }
  func.func @transform_5(%arg0: i32, %arg1: i32) -> (i32, i32) {
    %c0_i32 = arith.constant 0 : i32
    %c0_i32_0 = arith.constant 0 : i32
    %c0_i32_1 = arith.constant 0 : i32
    return %c0_i32, %c0_i32_0 : i32, i32
  }
  func.func @transform_6(%arg0: i32, %arg1: i32) -> (i32, i32) {
    %c0_i32 = arith.constant 0 : i32
    %c0_i32_0 = arith.constant 0 : i32
    return %arg0, %c0_i32 : i32, i32
  }
}

</mosaic_0001>

<bundles_post_ra>
// kernel: graphsage_forward.3
= control target key start
LH: loop header
LB: loop body
LE: loop exit
PB: predicated region body
PF: predicated region fallthrough
CT: control target
= control target key end

     0   :  { %s772_s1 = inlined_call_operand.vmem [shape: bf16[128,256], index: 1, kind: input, shape index: {}]   ;;  %s773_s0 = inlined_call_operand.vmem [shape: bf16[128,128], index: 0, kind: input, shape index: {}]   ;;  %s774_s2 = inlined_call_operand.vmem [shape: f32[1,128], index: 2, kind: input, shape index: {}]   ;;  %s775_s4 = inlined_call_operand.vmem [shape: f32[128,128], index: 4, kind: output, shape index: {1}]   ;;  %s776_s3 = inlined_call_operand.vmem [shape: bf16[128,128], index: 3, kind: output, shape index: {0}]  }
   0x1   :  { %v440_v0 = vld [vmem:[%s772_s1 + $0x70] sm:$0xf]  ;;  %v469_v1 = vld [vmem:[%s772_s1 + $0x74] sm:$0xf0]  ;;  %v468_v2 = vld [vmem:[%s772_s1 + $0x74] sm:$0xf] }
   0x2   :  { %v441_v3 = vor.u32 %v469_v1, %v440_v0  ;;  %v442_v4 = vld [vmem:[%s772_s1 + $0x78] sm:$0xf0]  ;;  %v432_v5 = vld [vmem:[%s772_s1 + $0x60] sm:$0xf]  ;;  %v467_v6 = vld [vmem:[%s772_s1 + $0x64] sm:$0xf0] }
   0x3   :  { %v445_v7 = vor.u32 %v468_v2, %v442_v4  ;;  %v466_v8 = vld [vmem:[%s772_s1 + $0x64] sm:$0xf]  ;;  %v434_v9 = vld [vmem:[%s772_s1 + $0x68] sm:$0xf0]  ;;  %v433_v10 = vor.u32 %v467_v6, %v432_v5  ;;  %v424_v12 = vld [vmem:[%s772_s1 + $0x50] sm:$0xf] }
   0x4   :  { %176 = vmatpush.bf16.msra.mxu0 %v441_v3  ;;  %517 = vmatpush.bf16.msra.mxu2 %v441_v3  ;;  %v437_v11 = vor.u32 %v466_v8, %v434_v9  ;;  %v465_v13 = vld [vmem:[%s772_s1 + $0x54] sm:$0xf0]  ;;  %v464_v14 = vld [vmem:[%s772_s1 + $0x54] sm:$0xf]  ;;  %v426_v15 = vld [vmem:[%s772_s1 + $0x58] sm:$0xf0] }
   0x5   :  { %225 = vmatpush.bf16.msra.mxu1 %v445_v7  ;;  %525 = vmatpush.bf16.msra.mxu3 %v445_v7  ;;  %v425_v16 = vor.u32 %v465_v13, %v424_v12  ;;  %v429_v17 = vor.u32 %v464_v14, %v426_v15  ;;  %v416_v18 = vld [vmem:[%s772_s1 + $0x40] sm:$0xf]  ;;  %v463_v19 = vld [vmem:[%s772_s1 + $0x44] sm:$0xf0]  ;;  %v462_v20 = vld [vmem:[%s772_s1 + $0x44] sm:$0xf] }
   0x6   :  { %v418_v21 = vld [vmem:[%s772_s1 + $0x48] sm:$0xf0]  ;;  %v417_v22 = vor.u32 %v463_v19, %v416_v18  ;;  %v408_v24 = vld [vmem:[%s772_s1 + $0x30] sm:$0xf]  ;;  %v461_v25 = vld [vmem:[%s772_s1 + $0x34] sm:$0xf0] }
   0x7   :  { %v421_v23 = vor.u32 %v462_v20, %v418_v21  ;;  %v460_v26 = vld [vmem:[%s772_s1 + $0x34] sm:$0xf]  ;;  %v410_v27 = vld [vmem:[%s772_s1 + $0x38] sm:$0xf0]  ;;  %v409_v28 = vor.u32 %v461_v25, %v408_v24  ;;  %v400_v30 = vld [vmem:[%s772_s1 + $0x20] sm:$0xf] }
   0x8   :  { %177 = vmatpush.bf16.msra.mxu0 %v433_v10  ;;  %518 = vmatpush.bf16.msra.mxu2 %v433_v10  ;;  %v413_v29 = vor.u32 %v460_v26, %v410_v27  ;;  %v459_v31 = vld [vmem:[%s772_s1 + $0x24] sm:$0xf0]  ;;  %v458_v32 = vld [vmem:[%s772_s1 + $0x24] sm:$0xf]  ;;  %v402_v33 = vld [vmem:[%s772_s1 + $0x28] sm:$0xf0] }
   0x9   :  { %226 = vmatpush.bf16.msra.mxu1 %v437_v11  ;;  %526 = vmatpush.bf16.msra.mxu3 %v437_v11  ;;  %v401_v34 = vor.u32 %v459_v31, %v400_v30  ;;  %v405_v35 = vor.u32 %v458_v32, %v402_v33  ;;  %v392_v36 = vld [vmem:[%s772_s1 + $0x10] sm:$0xf]  ;;  %v457_v37 = vld [vmem:[%s772_s1 + $0x14] sm:$0xf0]  ;;  %v456_v38 = vld [vmem:[%s772_s1 + $0x14] sm:$0xf] }
   0xa   :  { %v394_v39 = vld [vmem:[%s772_s1 + $0x18] sm:$0xf0]  ;;  %v393_v40 = vor.u32 %v457_v37, %v392_v36  ;;  %v384_v42 = vld [vmem:[%s772_s1] sm:$0xf]  ;;  %v455_v43 = vld [vmem:[%s772_s1 + $0x4] sm:$0xf0] }
   0xb   :  { %v397_v41 = vor.u32 %v456_v38, %v394_v39  ;;  %v454_v44 = vld [vmem:[%s772_s1 + $0x4] sm:$0xf]  ;;  %v386_v45 = vld [vmem:[%s772_s1 + $0x8] sm:$0xf0]  ;;  %v385_v46 = vor.u32 %v455_v43, %v384_v42  ;;  %v448_v52 = vld [vmem:[%s773_s0 + $0x10] sm:$0xff] }
   0xc   :  { %178 = vmatpush.bf16.msra.mxu0 %v425_v16  ;;  %519 = vmatpush.bf16.msra.mxu2 %v425_v16  ;;  %v389_v47 = vor.u32 %v454_v44, %v386_v45  ;;  %v446_v48 = vld [vmem:[%s773_s0] sm:$0xff]  ;;  %v447_v50 = vld [vmem:[%s773_s0 + $0x8] sm:$0xff]  ;;  %v452_v53 = vld [vmem:[%s773_s0 + $0x30] sm:$0xff] }
   0xd   :  { %227 = vmatpush.bf16.msra.mxu1 %v429_v17  ;;  %527 = vmatpush.bf16.msra.mxu3 %v429_v17  ;;  %v450_v49 = vld [vmem:[%s773_s0 + $0x20] sm:$0xff]  ;;  %v451_v51 = vld [vmem:[%s773_s0 + $0x28] sm:$0xff]  ;;  %v449_v54 = vld [vmem:[%s773_s0 + $0x18] sm:$0xff] }
   0xe   :  { %v453_v55 = vld [vmem:[%s773_s0 + $0x38] sm:$0xff]  ;;  %v682_v56 = vld [vmem:[%s774_s2] ss:$0 sm:$0xff] }
  0x10   :  { %179 = vmatpush.bf16.msra.mxu0 %v417_v22  ;;  %520 = vmatpush.bf16.msra.mxu2 %v417_v22 }
  0x11   :  { %228 = vmatpush.bf16.msra.mxu1 %v421_v23  ;;  %528 = vmatpush.bf16.msra.mxu3 %v421_v23 }
  0x14   :  { %180 = vmatpush.bf16.msra.mxu0 %v409_v28  ;;  %521 = vmatpush.bf16.msra.mxu2 %v409_v28 }
  0x15   :  { %229 = vmatpush.bf16.msra.mxu1 %v413_v29  ;;  %529 = vmatpush.bf16.msra.mxu3 %v413_v29 }
  0x18   :  { %181 = vmatpush.bf16.msra.mxu0 %v401_v34  ;;  %522 = vmatpush.bf16.msra.mxu2 %v401_v34 }
  0x19   :  { %230 = vmatpush.bf16.msra.mxu1 %v405_v35  ;;  %530 = vmatpush.bf16.msra.mxu3 %v405_v35 }
  0x1c   :  { %182 = vmatpush.bf16.msra.mxu0 %v393_v40  ;;  %523 = vmatpush.bf16.msra.mxu2 %v393_v40 }
  0x1d   :  { %231 = vmatpush.bf16.msra.mxu1 %v397_v41  ;;  %531 = vmatpush.bf16.msra.mxu3 %v397_v41 }
  0x20   :  { %183 = vmatpush.bf16.msra.mxu0 %v385_v46  ;;  %524 = vmatpush.bf16.msra.mxu2 %v385_v46 }
  0x21   :  { %232 = vmatpush.bf16.msra.mxu1 %v389_v47  ;;  %532 = vmatpush.bf16.msra.mxu3 %v389_v47 }
  0x23   :  { %184 = vmatmul.bf16.vlgmr.msra.gmra.mxu0 %v446_v48  ;;  %204 = vmatmul.bf16.vlgmr.msra.gmra.mxu2 %v450_v49 }
  0x24   :  { %233 = vmatmul.bf16.vlgmr.msra.gmra.mxu1 %v446_v48  ;;  %253 = vmatmul.bf16.vlgmr.msra.gmra.mxu3 %v450_v49 }
  0x33   :  { %189 = vmatmul.bf16.gmra.mxu0 %v447_v50  ;;  %209 = vmatmul.bf16.gmra.mxu2 %v451_v51 }
  0x34   :  { %238 = vmatmul.bf16.gmra.mxu1 %v447_v50  ;;  %258 = vmatmul.bf16.gmra.mxu3 %v451_v51 }
  0x43   :  { %194 = vmatmul.bf16.gmra.mxu0 %v448_v52  ;;  %214 = vmatmul.bf16.gmra.mxu2 %v452_v53 }
  0x44   :  { %243 = vmatmul.bf16.gmra.mxu1 %v448_v52  ;;  %263 = vmatmul.bf16.gmra.mxu3 %v452_v53 }
  0x53   :  { %199 = vmatmul.bf16.gmra.mxu0 %v449_v54  ;;  %219 = vmatmul.bf16.gmra.mxu2 %v453_v55 }
  0x54   :  { %248 = vmatmul.bf16.gmra.mxu1 %v449_v54  ;;  %268 = vmatmul.bf16.gmra.mxu3 %v453_v55 }
  0xa0   :  { %v185_v57 = vpop.f32.mrf.mxu0 }
  0xa1   :  { %v234_v58 = vpop.f32.mrf.mxu1 }
  0xa2   :  { %v310_v59 = vadd.f32 %v682_v56, %v234_v58 }
  0xa4   :  { %326 = vst [vmem:[%s775_s4] sm:$0xff] %v310_v59 }
  0xa6   :  { %v205_v60 = vpop.f32.mrf.mxu2 }
  0xa7   :  { %v254_v61 = vpop.f32.mrf.mxu3 }
  0xa8   :  { %v318_v62 = vadd.f32 %v682_v56, %v254_v61  ;;  %v187_v63 = vpop.f32.mrf.mxu0 }
  0xa9   :  { %v473_v0 = vpack.c.bf16 %v187_v63, %v185_v57  ;;  %v236_v1 = vpop.f32.mrf.mxu1 }
  0xaa   :  { %334 = vst [vmem:[%s775_s4 + $0x40] sm:$0xff] %v318_v62  ;;  %v311_v2 = vadd.f32 %v682_v56, %v236_v1 }
  0xab   :  { %474 = vst [vmem:[%s776_s3] sm:$0xff] %v473_v0  }
  0xac   :  { %327 = vst [vmem:[%s775_s4 + $0x8] sm:$0xff] %v311_v2 }
  0xae   :  { %v207_v3 = vpop.f32.mrf.mxu2 }
  0xaf   :  { %v493_v4 = vpack.c.bf16 %v207_v3, %v205_v60  ;;  %v256_v5 = vpop.f32.mrf.mxu3 }
  0xb0   :  { %v319_v6 = vadd.f32 %v682_v56, %v256_v5  ;;  %v190_v7 = vpop.f32.mrf.mxu0 }
  0xb1   :  { %513 = vst [vmem:[%s776_s3 + $0x20] sm:$0xff] %v493_v4   ;;  %v239_v8 = vpop.f32.mrf.mxu1 }
  0xb2   :  { %335 = vst [vmem:[%s775_s4 + $0x48] sm:$0xff] %v319_v6  ;;  %v312_v9 = vadd.f32 %v682_v56, %v239_v8 }
  0xb4   :  { %328 = vst [vmem:[%s775_s4 + $0x10] sm:$0xff] %v312_v9 }
  0xb6   :  { %v210_v10 = vpop.f32.mrf.mxu2 }
  0xb7   :  { %v259_v11 = vpop.f32.mrf.mxu3 }
  0xb8   :  { %v320_v12 = vadd.f32 %v682_v56, %v259_v11  ;;  %v192_v13 = vpop.f32.mrf.mxu0 }
  0xb9   :  { %v478_v14 = vpack.c.bf16 %v192_v13, %v190_v7  ;;  %v241_v15 = vpop.f32.mrf.mxu1 }
  0xba   :  { %336 = vst [vmem:[%s775_s4 + $0x50] sm:$0xff] %v320_v12  ;;  %v313_v16 = vadd.f32 %v682_v56, %v241_v15 }
  0xbb   :  { %510 = vst [vmem:[%s776_s3 + $0x8] sm:$0xff] %v478_v14  }
  0xbc   :  { %329 = vst [vmem:[%s775_s4 + $0x18] sm:$0xff] %v313_v16 }
  0xbe   :  { %v212_v17 = vpop.f32.mrf.mxu2 }
  0xbf   :  { %v498_v18 = vpack.c.bf16 %v212_v17, %v210_v10  ;;  %v261_v19 = vpop.f32.mrf.mxu3 }
  0xc0   :  { %v321_v20 = vadd.f32 %v682_v56, %v261_v19  ;;  %v195_v21 = vpop.f32.mrf.mxu0 }
  0xc1   :  { %514 = vst [vmem:[%s776_s3 + $0x28] sm:$0xff] %v498_v18   ;;  %v244_v22 = vpop.f32.mrf.mxu1 }
  0xc2   :  { %337 = vst [vmem:[%s775_s4 + $0x58] sm:$0xff] %v321_v20  ;;  %v314_v23 = vadd.f32 %v682_v56, %v244_v22 }
  0xc4   :  { %330 = vst [vmem:[%s775_s4 + $0x20] sm:$0xff] %v314_v23 }
  0xc6   :  { %v215_v24 = vpop.f32.mrf.mxu2 }
  0xc7   :  { %v264_v25 = vpop.f32.mrf.mxu3 }
  0xc8   :  { %v322_v26 = vadd.f32 %v682_v56, %v264_v25  ;;  %v197_v27 = vpop.f32.mrf.mxu0 }
  0xc9   :  { %v483_v28 = vpack.c.bf16 %v197_v27, %v195_v21  ;;  %v246_v29 = vpop.f32.mrf.mxu1 }
  0xca   :  { %338 = vst [vmem:[%s775_s4 + $0x60] sm:$0xff] %v322_v26  ;;  %v315_v30 = vadd.f32 %v682_v56, %v246_v29 }
  0xcb   :  { %511 = vst [vmem:[%s776_s3 + $0x10] sm:$0xff] %v483_v28  }
  0xcc   :  { %331 = vst [vmem:[%s775_s4 + $0x28] sm:$0xff] %v315_v30 }
  0xce   :  { %v217_v31 = vpop.f32.mrf.mxu2 }
  0xcf   :  { %v503_v32 = vpack.c.bf16 %v217_v31, %v215_v24  ;;  %v266_v33 = vpop.f32.mrf.mxu3 }
  0xd0   :  { %v323_v34 = vadd.f32 %v682_v56, %v266_v33  ;;  %v200_v35 = vpop.f32.mrf.mxu0 }
  0xd1   :  { %515 = vst [vmem:[%s776_s3 + $0x30] sm:$0xff] %v503_v32   ;;  %v249_v36 = vpop.f32.mrf.mxu1 }
  0xd2   :  { %339 = vst [vmem:[%s775_s4 + $0x68] sm:$0xff] %v323_v34  ;;  %v316_v37 = vadd.f32 %v682_v56, %v249_v36 }
  0xd4   :  { %332 = vst [vmem:[%s775_s4 + $0x30] sm:$0xff] %v316_v37 }
  0xd6   :  { %v220_v38 = vpop.f32.mrf.mxu2 }
  0xd7   :  { %v269_v39 = vpop.f32.mrf.mxu3 }
  0xd8   :  { %v324_v40 = vadd.f32 %v682_v56, %v269_v39  ;;  %v202_v41 = vpop.f32.mrf.mxu0 }
  0xd9   :  { %v488_v42 = vpack.c.bf16 %v202_v41, %v200_v35  ;;  %v251_v43 = vpop.f32.mrf.mxu1 }
  0xda   :  { %340 = vst [vmem:[%s775_s4 + $0x70] sm:$0xff] %v324_v40  ;;  %v317_v44 = vadd.f32 %v682_v56, %v251_v43 }
  0xdb   :  { %512 = vst [vmem:[%s776_s3 + $0x18] sm:$0xff] %v488_v42  }
  0xdc   :  { %333 = vst [vmem:[%s775_s4 + $0x38] sm:$0xff] %v317_v44 }
  0xde   :  { %v222_v45 = vpop.f32.mrf.mxu2 }
  0xdf   :  { %v508_v46 = vpack.c.bf16 %v222_v45, %v220_v38  ;;  %v271_v47 = vpop.f32.mrf.mxu3 }
  0xe0   :  { %v325_v48 = vadd.f32 %v682_v56, %v271_v47 }
  0xe1   :  { %516 = vst [vmem:[%s776_s3 + $0x38] sm:$0xff] %v508_v46  }
  0xe2   :  { %341 = vst [vmem:[%s775_s4 + $0x78] sm:$0xff] %v325_v48 }

// kernel: graphsage_forward.4
= control target key start
LH: loop header
LB: loop body
LE: loop exit
PB: predicated region body
PF: predicated region fallthrough
CT: control target
= control target key end

     0   :  { %v903_v1 = vmov 0   ;;  %s1269_s1 = inlined_call_operand.vmem [shape: bf16[128,128], index: 1, kind: input, shape index: {}]   ;;  %s1270_s3 = inlined_call_operand.vmem [shape: f32[128,1], index: 3, kind: input, shape index: {}]   ;;  %s1271_s0 = inlined_call_operand.vmem [shape: s8[128,128], index: 0, kind: input, shape index: {}]   ;;  %s1272_s4 = inlined_call_operand.vmem [shape: bf16[128,256], index: 4, kind: input, shape index: {}]   ;;  %s1273_s2 = inlined_call_operand.vmem [shape: f32[128,128], index: 2, kind: input, shape index: {}]   ;;  %s1274_s5 = inlined_call_operand.vmem [shape: f32[1,128], index: 5, kind: input, shape index: {}]   ;;  %s1275_s7 = inlined_call_operand.vmem [shape: f32[128,128], index: 7, kind: output, shape index: {1}]   ;;  %s1276_s6 = inlined_call_operand.vmem [shape: bf16[128,128], index: 6, kind: output, shape index: {0}]  }
   0x1   :  { %v810_v0 = vld [vmem:[%s1269_s1 + $0x38] sm:$0xff]  ;;  %899 = vset.pattern.permute.xlu0 %v903_v1  ;;  %v269_v2 = vld [vmem:[%s1270_s3] sm:$0xff]  ;;  %900 = vset.pattern.permute.xlu1 %v903_v1  ;;  %v809_v3 = vld [vmem:[%s1269_s1 + $0x30] sm:$0xff] }
   0x2   :  { %287 = vperm.xlu0 %899, %v269_v2   ;;  %901 = vset.pattern.permute.xlu2 %v903_v1  ;;  %v271_v4 = vld [vmem:[%s1270_s3 + $0x10] sm:$0xff]  ;;  %v808_v5 = vld [vmem:[%s1269_s1 + $0x28] sm:$0xff]  ;;  %v272_v7 = vld [vmem:[%s1270_s3 + $0x18] sm:$0xff] }
   0x3   :  { %169 = vmatpush.bf16.msra.mxu0 %v810_v0  ;;  %874 = vmatpush.bf16.msra.mxu3 %v810_v0  ;;  %v270_v6 = vld [vmem:[%s1270_s3 + $0x8] sm:$0xff]  ;;  %v807_v8 = vld [vmem:[%s1269_s1 + $0x20] sm:$0xff]  ;;  %v806_v9 = vld [vmem:[%s1269_s1 + $0x18] sm:$0xff] }
   0x4   :  { %297 = vperm.xlu1 %900, %v271_v4   ;;  %v281_v10 = vld [vmem:[%s1270_s3 + $0x60] sm:$0xff]  ;;  %v282_v11 = vld [vmem:[%s1270_s3 + $0x68] sm:$0xff]  ;;  %v805_v12 = vld [vmem:[%s1269_s1 + $0x10] sm:$0xff] }
   0x5   :  { %v45_v13 = vld [vmem:[%s1271_s0] sm:$0xff]  ;;  %v48_v14 = vld [vmem:[%s1271_s0 + $0x18] sm:$0xff]  ;;  %v804_v19 = vld [vmem:[%s1269_s1 + $0x8] sm:$0xff] }
   0x6   :  { %v49_v15 = vunpack.c.0.s8 %v45_v13  ;;  %v50_v16 = vunpack.c.1.s8 %v45_v13  ;;  %v61_v17 = vunpack.c.0.s8 %v48_v14  ;;  %v62_v18 = vunpack.c.1.s8 %v48_v14  ;;  %v276_v20 = vld [vmem:[%s1270_s3 + $0x38] sm:$0xff]  ;;  %v283_v25 = vld [vmem:[%s1270_s3 + $0x70] sm:$0xff]  ;;  %v803_v26 = vld [vmem:[%s1269_s1] sm:$0xff] }
   0x7   :  { %170 = vmatpush.bf16.msra.mxu0 %v809_v3  ;;  %875 = vmatpush.bf16.msra.mxu3 %v809_v3  ;;  %v277_v29 = vld [vmem:[%s1270_s3 + $0x40] sm:$0xff]  ;;  %v278_v30 = vld [vmem:[%s1270_s3 + $0x48] sm:$0xff]  ;;  %v51_v32 = vunpack.c.2.s8 %v45_v13  ;;  %v52_v33 = vunpack.c.3.s8 %v45_v13  ;;  %v63_v34 = vunpack.c.2.s8 %v48_v14  ;;  %v64_v35 = vunpack.c.3.s8 %v48_v14  ;;  %v280_v36 = vld [vmem:[%s1270_s3 + $0x58] sm:$0xff] }
   0x8   :  { %v65_v21 = vcvt.s32.f32 %v49_v15  ;;  %v66_v22 = vcvt.s32.f32 %v50_v16  ;;  %v77_v23 = vcvt.s32.f32 %v61_v17  ;;  %v78_v24 = vcvt.s32.f32 %v62_v18  ;;  %v273_v31 = vld [vmem:[%s1270_s3 + $0x20] sm:$0xff]  ;;  %v274_v37 = vld [vmem:[%s1270_s3 + $0x28] sm:$0xff]  ;;  %v275_v44 = vld [vmem:[%s1270_s3 + $0x30] sm:$0xff] }
   0x9   :  { %307 = vperm.xlu2 %901, %v273_v31   ;;  %v67_v38 = vcvt.s32.f32 %v51_v32  ;;  %v68_v39 = vcvt.s32.f32 %v52_v33  ;;  %v79_v40 = vcvt.s32.f32 %v63_v34  ;;  %v80_v41 = vcvt.s32.f32 %v64_v35  ;;  %v46_v45 = vld [vmem:[%s1271_s0 + $0x8] sm:$0xff]  ;;  %v284_v48 = vld [vmem:[%s1270_s3 + $0x78] sm:$0xff]  ;;  %v279_v52 = vld [vmem:[%s1270_s3 + $0x50] sm:$0xff] }
   0xa   :  { %292 = vperm.xlu0 %899, %v270_v6   ;;  %v81_v27 = vpack.c.bf16 %v66_v22, %v65_v21  ;;  %v87_v28 = vpack.c.bf16 %v78_v24, %v77_v23  ;;  %v53_v46 = vunpack.c.0.s8 %v46_v45  ;;  %v54_v47 = vunpack.c.1.s8 %v46_v45  ;;  %v47_v58 = vld [vmem:[%s1271_s0 + $0x10] sm:$0xff]  ;;  %v823_v13 = vld [vmem:[%s1272_s4 + $0x64] sm:$0xf]  ;;  %v791_v14 = vld [vmem:[%s1272_s4 + $0x68] sm:$0xf0] }
   0xb   :  { %171 = vmatpush.bf16.msra.mxu0 %v808_v5  ;;  %876 = vmatpush.bf16.msra.mxu3 %v808_v5  ;;  %v82_v42 = vpack.c.bf16 %v68_v39, %v67_v38  ;;  %v88_v43 = vpack.c.bf16 %v80_v41, %v79_v40  ;;  %v55_v53 = vunpack.c.2.s8 %v46_v45  ;;  %v56_v54 = vunpack.c.3.s8 %v46_v45  ;;  %v797_v4 = vld [vmem:[%s1272_s4 + $0x70] sm:$0xf]  ;;  %v826_v5 = vld [vmem:[%s1272_s4 + $0x74] sm:$0xf0]  ;;  %v825_v6 = vld [vmem:[%s1272_s4 + $0x74] sm:$0xf] }
   0xc   :  { %302 = vperm.xlu1 %900, %v272_v7   ;;  %v69_v49 = vcvt.s32.f32 %v53_v46  ;;  %v70_v50 = vcvt.s32.f32 %v54_v47  ;;  %v57_v59 = vunpack.c.0.s8 %v47_v58  ;;  %v58_v60 = vunpack.c.1.s8 %v47_v58  ;;  %v781_v17 = vld [vmem:[%s1272_s4 + $0x50] sm:$0xf]  ;;  %v822_v18 = vld [vmem:[%s1272_s4 + $0x54] sm:$0xf0]  ;;  %v783_v21 = vld [vmem:[%s1272_s4 + $0x58] sm:$0xf0] }
   0xd   :  { %v71_v55 = vcvt.s32.f32 %v55_v53  ;;  %v72_v56 = vcvt.s32.f32 %v56_v54  ;;  %v59_v0 = vunpack.c.2.s8 %v47_v58  ;;  %v60_v1 = vunpack.c.3.s8 %v47_v58  ;;  %v773_v22 = vld [vmem:[%s1272_s4 + $0x40] sm:$0xf]  ;;  %v820_v23 = vld [vmem:[%s1272_s4 + $0x44] sm:$0xf0]  ;;  %v817_v31 = vld [vmem:[%s1272_s4 + $0x34] sm:$0xf] }
   0xe   :  { %v83_v51 = vpack.c.bf16 %v70_v50, %v69_v49  ;;  %v73_v61 = vcvt.s32.f32 %v57_v59  ;;  %v74_v62 = vcvt.s32.f32 %v58_v60  ;;  %v798_v7 = vor.u32 %v826_v5, %v797_v4  ;;  %v767_v33 = vld [vmem:[%s1272_s4 + $0x38] sm:$0xf0]  ;;  %v757_v35 = vld [vmem:[%s1272_s4 + $0x20] sm:$0xf]  ;;  %v759_v39 = vld [vmem:[%s1272_s4 + $0x28] sm:$0xf0] }
   0xf   :  { %172 = vmatpush.bf16.msra.mxu0 %v807_v8  ;;  %877 = vmatpush.bf16.msra.mxu3 %v807_v8  ;;  %v84_v57 = vpack.c.bf16 %v72_v56, %v71_v55  ;;  %v75_v2 = vcvt.s32.f32 %v59_v0  ;;  %v76_v3 = vcvt.s32.f32 %v60_v1  ;;  %v799_v8 = vld [vmem:[%s1272_s4 + $0x78] sm:$0xf0]  ;;  %v794_v16 = vor.u32 %v823_v13, %v791_v14  ;;  %v749_v41 = vld [vmem:[%s1272_s4 + $0x10] sm:$0xf]  ;;  %v741_v47 = vld [vmem:[%s1272_s4] sm:$0xf] }
  0x10   :  { %v85_v63 = vpack.c.bf16 %v74_v62, %v73_v61  ;;  %533 = vmatpush.bf16.msra.mxu1 %v798_v7  ;;  %v770_v34 = vor.u32 %v817_v31, %v767_v33  ;;  %v751_v45 = vld [vmem:[%s1272_s4 + $0x18] sm:$0xf0]  ;;  %v811_v49 = vld [vmem:[%s1272_s4 + $0x4] sm:$0xf]  ;;  %v395_v31 = vld [vmem:[%s1273_s2 + $0x70] sm:$0xff] }
  0x11   :  { %312 = vperm.xlu2 %901, %v274_v37   ;;  %v815_v37 = vld [vmem:[%s1272_s4 + $0x24] sm:$0xf] }
  0x12   :  { %347 = vperm.xlu0 %899, %v281_v10   ;;  %v824_v10 = vld [vmem:[%s1272_s4 + $0x64] sm:$0xf0]  ;;  %v762_v40 = vor.u32 %v815_v37, %v759_v39  ;;  %v381_v60 = vld [vmem:[%s1273_s2] sm:$0xff] }
  0x13   :  { %173 = vmatpush.bf16.msra.mxu0 %v806_v9  ;;  %878 = vmatpush.bf16.msra.mxu3 %v806_v9  ;;  %v789_v9 = vld [vmem:[%s1272_s4 + $0x60] sm:$0xf] }
  0x14   :  { %352 = vperm.xlu1 %900, %v282_v11   ;;  %v86_v11 = vpack.c.bf16 %v76_v3, %v75_v2  ;;  %v790_v15 = vor.u32 %v824_v10, %v789_v9 }
  0x16   :  { %534 = vmatpush.bf16.msra.mxu1 %v790_v15 }
  0x17   :  { %174 = vmatpush.bf16.msra.mxu0 %v805_v12  ;;  %879 = vmatpush.bf16.msra.mxu3 %v805_v12  ;;  %v1046_v12 = vor.u32 %v825_v6, %v799_v8  ;;  %v393_v6 = vld [vmem:[%s1273_s2 + $0x60] sm:$0xff] }
  0x19   :  { %317 = vperm.xlu2 %901, %v275_v44   ;;  %582 = vmatpush.bf16.msra.mxu2 %v1046_v12  ;;  %v813_v44 = vld [vmem:[%s1272_s4 + $0x14] sm:$0xf] }
  0x1a   :  { %322 = vperm.xlu0 %899, %v276_v20   ;;  %v782_v20 = vor.u32 %v822_v18, %v781_v17  ;;  %v754_v46 = vor.u32 %v813_v44, %v751_v45 }
  0x1b   :  { %175 = vmatpush.bf16.msra.mxu0 %v804_v19  ;;  %880 = vmatpush.bf16.msra.mxu3 %v804_v19  ;;  %v821_v19 = vld [vmem:[%s1272_s4 + $0x54] sm:$0xf] }
  0x1c   :  { %357 = vperm.xlu1 %900, %v283_v25   ;;  %v786_v24 = vor.u32 %v821_v19, %v783_v21  ;;  %v819_v25 = vld [vmem:[%s1272_s4 + $0x44] sm:$0xf]  ;;  %535 = vmatpush.bf16.msra.mxu1 %v782_v20 }
  0x1d   :  { %583 = vmatpush.bf16.msra.mxu2 %v794_v16 }
  0x1f   :  { %176 = vmatpush.bf16.msra.mxu0 %v803_v26  ;;  %881 = vmatpush.bf16.msra.mxu3 %v803_v26  ;;  %v775_v26 = vld [vmem:[%s1272_s4 + $0x48] sm:$0xf0] }
  0x21   :  { %362 = vperm.xlu2 %901, %v284_v48   ;;  %584 = vmatpush.bf16.msra.mxu2 %v786_v24  ;;  %v812_v48 = vld [vmem:[%s1272_s4 + $0x4] sm:$0xf0] }
  0x22   :  { %177 = vmatmul.bf16.vlgmr.msra.gmra.mxu0 %v81_v27  ;;  %207 = vmatmul.bf16.vlgmr.msra.gmra.mxu3 %v87_v28  ;;  %v774_v27 = vor.u32 %v820_v23, %v773_v22  ;;  %v778_v28 = vor.u32 %v819_v25, %v775_v26  ;;  %v742_v50 = vor.u32 %v812_v48, %v741_v47  ;;  %v383_v22 = vld [vmem:[%s1273_s2 + $0x10] sm:$0xff]  ;;  %v384_v25 = vld [vmem:[%s1273_s2 + $0x18] sm:$0xff]  ;;  %v386_v48 = vld [vmem:[%s1273_s2 + $0x28] sm:$0xff] }
  0x23   :  { %327 = vperm.xlu0 %899, %v277_v29   ;;  %882 = vmatpush.bf16.msrb.mxu3 %v798_v7  ;;  %v765_v29 = vld [vmem:[%s1272_s4 + $0x30] sm:$0xf] }
  0x24   :  { %332 = vperm.xlu1 %900, %v278_v30   ;;  %536 = vmatpush.bf16.msra.mxu1 %v774_v27  ;;  %v818_v30 = vld [vmem:[%s1272_s4 + $0x34] sm:$0xf0] }
  0x25   :  { %585 = vmatpush.bf16.msra.mxu2 %v778_v28  ;;  %v766_v32 = vor.u32 %v818_v30, %v765_v29 }
  0x27   :  { %883 = vmatpush.bf16.msrb.mxu3 %v790_v15 }
  0x28   :  { %537 = vmatpush.bf16.msra.mxu1 %v766_v32 }
  0x29   :  { %337 = vperm.xlu2 %901, %v279_v52   ;;  %586 = vmatpush.bf16.msra.mxu2 %v770_v34 }
  0x2b   :  { %342 = vperm.xlu0 %899, %v280_v36   ;;  %884 = vmatpush.bf16.msrb.mxu3 %v782_v20  ;;  %v816_v36 = vld [vmem:[%s1272_s4 + $0x24] sm:$0xf0] }
  0x2c   :  { %v758_v38 = vor.u32 %v816_v36, %v757_v35  ;;  %v396_v36 = vld [vmem:[%s1273_s2 + $0x78] sm:$0xff] }
  0x2d   :  { %587 = vmatpush.bf16.msra.mxu2 %v762_v40 }
  0x2e   :  { %538 = vmatpush.bf16.msra.mxu1 %v758_v38 }
  0x2f   :  { %885 = vmatpush.bf16.msrb.mxu3 %v774_v27 }
  0x31   :  { %588 = vmatpush.bf16.msra.mxu2 %v754_v46 }
  0x32   :  { %182 = vmatmul.bf16.gmra.mxu0 %v82_v42  ;;  %212 = vmatmul.bf16.gmra.mxu3 %v88_v43  ;;  %v814_v42 = vld [vmem:[%s1272_s4 + $0x14] sm:$0xf0] }
  0x33   :  { %886 = vmatpush.bf16.msrb.mxu3 %v766_v32  ;;  %v750_v43 = vor.u32 %v814_v42, %v749_v41 }
  0x35   :  { %539 = vmatpush.bf16.msra.mxu1 %v750_v43 }
  0x37   :  { %887 = vmatpush.bf16.msrb.mxu3 %v758_v38 }
  0x39   :  { %540 = vmatpush.bf16.msra.mxu1 %v742_v50 }
  0x3b   :  { %888 = vmatpush.bf16.msrb.mxu3 %v750_v43 }
  0x3f   :  { %889 = vmatpush.bf16.msrb.mxu3 %v742_v50 }
  0x42   :  { %187 = vmatmul.bf16.gmra.mxu0 %v83_v51  ;;  %v743_v51 = vld [vmem:[%s1272_s4 + $0x8] sm:$0xf0] }
  0x43   :  { %v746_v52 = vor.u32 %v811_v49, %v743_v51  ;;  %890 = vmatpush.bf16.msra.mxu3 %v1046_v12 }
  0x45   :  { %589 = vmatpush.bf16.msra.mxu2 %v746_v52 }
  0x47   :  { %891 = vmatpush.bf16.msra.mxu3 %v794_v16 }
  0x4b   :  { %892 = vmatpush.bf16.msra.mxu3 %v786_v24 }
  0x4f   :  { %893 = vmatpush.bf16.msra.mxu3 %v778_v28 }
  0x52   :  { %192 = vmatmul.bf16.gmra.mxu0 %v84_v57 }
  0x53   :  { %894 = vmatpush.bf16.msra.mxu3 %v770_v34 }
  0x57   :  { %895 = vmatpush.bf16.msra.mxu3 %v762_v40 }
  0x5b   :  { %896 = vmatpush.bf16.msra.mxu3 %v754_v46  ;;  %v385_v46 = vld [vmem:[%s1273_s2 + $0x20] sm:$0xff] }
  0x5f   :  { %897 = vmatpush.bf16.msra.mxu3 %v746_v52 }
  0x62   :  { %197 = vmatmul.bf16.gmra.mxu0 %v85_v63  ;;  %v382_v63 = vld [vmem:[%s1273_s2 + $0x8] sm:$0xff] }
  0x63   :  { %v308_v56 = vpop.permute.xlu2 %307 }
  0x6b   :  { %v313_v3 = vpop.permute.xlu2 %312 }
  0x72   :  { %202 = vmatmul.bf16.gmra.mxu0 %v86_v11  ;;  %v394_v11 = vld [vmem:[%s1273_s2 + $0x68] sm:$0xff] }
  0x73   :  { %v318_v19 = vpop.permute.xlu2 %317 }
  0x74   :  { %v288_v53 = vpop.permute.xlu0 %287 }
  0x76   :  { %v298_v54 = vpop.permute.xlu1 %297 }
  0x7b   :  { %v363_v34 = vpop.permute.xlu2 %362 }
  0x7c   :  { %v293_v55 = vpop.permute.xlu0 %292 }
  0x7e   :  { %v303_v58 = vpop.permute.xlu1 %302 }
  0x84   :  { %v348_v2 = vpop.permute.xlu0 %347 }
  0x86   :  { %v353_v9 = vpop.permute.xlu1 %352 }
  0x8e   :  { %v358_v28 = vpop.permute.xlu1 %357 }
  0x9f   :  { %v178_v57 = vpop.f32.mrf.mxu0 }
  0xa0   :  { %v365_v59 = vmul.f32 %v288_v53, %v178_v57  ;;  %v387_v57 = vld [vmem:[%s1273_s2 + $0x30] sm:$0xff] }
  0xa2   :  { %v397_v0 = vadd.f32 %v381_v60, %v365_v59  ;;  %v388_v60 = vld [vmem:[%s1273_s2 + $0x38] sm:$0xff] }
  0xa4   :  { %v413_v7 = vmax.f32 %v397_v0, 0.0 }
  0xa5   :  { %v208_v61 = vpop.f32.mrf.mxu3 }
  0xa6   :  { %v377_v4 = vmul.f32 %v348_v2, %v208_v61 }
  0xa7   :  { %v180_v62 = vpop.f32.mrf.mxu0 }
  0xa8   :  { %v366_v1 = vmul.f32 %v293_v55, %v180_v62  ;;  %v409_v12 = vadd.f32 %v393_v6, %v377_v4  ;;  %v389_v6 = vld [vmem:[%s1273_s2 + $0x40] sm:$0xff] }
  0xaa   :  { %v398_v5 = vadd.f32 %v382_v63, %v366_v1  ;;  %v425_v17 = vmax.f32 %v409_v12, 0.0 }
  0xac   :  { %v414_v8 = vmax.f32 %v398_v5, 0.0 }
  0xad   :  { %v210_v10 = vpop.f32.mrf.mxu3 }
  0xae   :  { %v378_v13 = vmul.f32 %v353_v9, %v210_v10  ;;  %v429_v14 = vpack.c.bf16 %v414_v8, %v413_v7  ;;  %v333_v7 = vpop.permute.xlu1 %332  ;;  %v390_v9 = vld [vmem:[%s1273_s2 + $0x48] sm:$0xff] }
  0xaf   :  { %v183_v15 = vpop.f32.mrf.mxu0 }
  0xb0   :  { %v410_v16 = vadd.f32 %v394_v11, %v378_v13  ;;  %541 = vmatmul.bf16.vlgmr.msra.gmra.mxu1 %v429_v14  ;;  %590 = vmatmul.bf16.vlgmr.msra.gmra.mxu2 %v429_v14  ;;  %v367_v20 = vmul.f32 %v298_v54, %v183_v15 }
  0xb2   :  { %v426_v18 = vmax.f32 %v410_v16, 0.0  ;;  %v399_v26 = vadd.f32 %v383_v22, %v367_v20  ;;  %v392_v22 = vld [vmem:[%s1273_s2 + $0x58] sm:$0xff] }
  0xb4   :  { %v435_v21 = vpack.c.bf16 %v426_v18, %v425_v17  ;;  %v415_v32 = vmax.f32 %v399_v26, 0.0  ;;  %v338_v17 = vpop.permute.xlu2 %337 }
  0xb5   :  { %v213_v23 = vpop.f32.mrf.mxu3 }
  0xb6   :  { %571 = vmatmul.bf16.vlgmr.msrb.gmra.mxu3 %v435_v21  ;;  %v379_v29 = vmul.f32 %v358_v28, %v213_v23 }
  0xb7   :  { %v185_v24 = vpop.f32.mrf.mxu0 }
  0xb8   :  { %v368_v27 = vmul.f32 %v303_v58, %v185_v24  ;;  %v411_v37 = vadd.f32 %v395_v31, %v379_v29  ;;  %v323_v58 = vpop.permute.xlu0 %322 }
  0xba   :  { %v400_v30 = vadd.f32 %v384_v25, %v368_v27  ;;  %v427_v42 = vmax.f32 %v411_v37, 0.0 }
  0xbc   :  { %v416_v33 = vmax.f32 %v400_v30, 0.0  ;;  %v1179_v30 = vld [vmem:[%s1274_s5] ss:$0 sm:$0xff] }
  0xbd   :  { %v215_v35 = vpop.f32.mrf.mxu3 }
  0xbe   :  { %v380_v38 = vmul.f32 %v363_v34, %v215_v35  ;;  %v430_v39 = vpack.c.bf16 %v416_v33, %v415_v32 }
  0xbf   :  { %v188_v40 = vpop.f32.mrf.mxu0 }
  0xc0   :  { %v412_v41 = vadd.f32 %v396_v36, %v380_v38  ;;  %546 = vmatmul.bf16.gmra.mxu1 %v430_v39  ;;  %595 = vmatmul.bf16.gmra.mxu2 %v430_v39  ;;  %v369_v44 = vmul.f32 %v308_v56, %v188_v40  ;;  %v328_v4 = vpop.permute.xlu0 %327 }
  0xc2   :  { %v428_v43 = vmax.f32 %v412_v41, 0.0  ;;  %v401_v49 = vadd.f32 %v385_v46, %v369_v44 }
  0xc4   :  { %v436_v45 = vpack.c.bf16 %v428_v43, %v427_v42  ;;  %v417_v52 = vmax.f32 %v401_v49, 0.0 }
  0xc6   :  { %576 = vmatmul.bf16.gmra.mxu3 %v436_v45 }
  0xc7   :  { %v190_v47 = vpop.f32.mrf.mxu0 }
  0xc8   :  { %v370_v50 = vmul.f32 %v313_v3, %v190_v47  ;;  %v343_v20 = vpop.permute.xlu0 %342 }
  0xca   :  { %v402_v51 = vadd.f32 %v386_v48, %v370_v50 }
  0xcc   :  { %v418_v53 = vmax.f32 %v402_v51, 0.0 }
  0xce   :  { %v431_v54 = vpack.c.bf16 %v418_v53, %v417_v52 }
  0xcf   :  { %v193_v55 = vpop.f32.mrf.mxu0 }
  0xd0   :  { %551 = vmatmul.bf16.gmra.mxu1 %v431_v54  ;;  %600 = vmatmul.bf16.gmra.mxu2 %v431_v54  ;;  %v371_v56 = vmul.f32 %v318_v19, %v193_v55  ;;  %v391_v19 = vld [vmem:[%s1273_s2 + $0x50] sm:$0xff] }
  0xd2   :  { %v403_v61 = vadd.f32 %v387_v57, %v371_v56 }
  0xd4   :  { %v419_v0 = vmax.f32 %v403_v61, 0.0 }
  0xd6   :  { %620 = vmatmul.bf16.vlgmr.msra.gmra.mxu3 %v435_v21 }
  0xd7   :  { %v195_v59 = vpop.f32.mrf.mxu0 }
  0xd8   :  { %v372_v62 = vmul.f32 %v323_v58, %v195_v59 }
  0xda   :  { %v404_v63 = vadd.f32 %v388_v60, %v372_v62 }
  0xdc   :  { %v420_v1 = vmax.f32 %v404_v63, 0.0 }
  0xde   :  { %v432_v2 = vpack.c.bf16 %v420_v1, %v419_v0 }
  0xdf   :  { %v198_v3 = vpop.f32.mrf.mxu0 }
  0xe0   :  { %556 = vmatmul.bf16.gmra.mxu1 %v432_v2  ;;  %605 = vmatmul.bf16.gmra.mxu2 %v432_v2  ;;  %v373_v5 = vmul.f32 %v328_v4, %v198_v3 }
  0xe2   :  { %v405_v10 = vadd.f32 %v389_v6, %v373_v5 }
  0xe4   :  { %v421_v13 = vmax.f32 %v405_v10, 0.0 }
  0xe6   :  { %625 = vmatmul.bf16.gmra.mxu3 %v436_v45 }
  0xe7   :  { %v200_v8 = vpop.f32.mrf.mxu0 }
  0xe8   :  { %v374_v11 = vmul.f32 %v333_v7, %v200_v8 }
  0xea   :  { %v406_v12 = vadd.f32 %v390_v9, %v374_v11 }
  0xec   :  { %v422_v14 = vmax.f32 %v406_v12, 0.0 }
  0xee   :  { %v433_v15 = vpack.c.bf16 %v422_v14, %v421_v13 }
  0xef   :  { %v203_v16 = vpop.f32.mrf.mxu0 }
  0xf0   :  { %561 = vmatmul.bf16.gmra.mxu1 %v433_v15  ;;  %610 = vmatmul.bf16.gmra.mxu2 %v433_v15  ;;  %v375_v18 = vmul.f32 %v338_v17, %v203_v16 }
  0xf2   :  { %v407_v23 = vadd.f32 %v391_v19, %v375_v18 }
  0xf4   :  { %v423_v26 = vmax.f32 %v407_v23, 0.0 }
  0xf7   :  { %v205_v21 = vpop.f32.mrf.mxu0 }
  0xf8   :  { %v376_v24 = vmul.f32 %v343_v20, %v205_v21 }
  0xfa   :  { %v408_v25 = vadd.f32 %v392_v22, %v376_v24 }
  0xfc   :  { %v424_v27 = vmax.f32 %v408_v25, 0.0 }
  0xfe   :  { %v434_v28 = vpack.c.bf16 %v424_v27, %v423_v26 }
 0x100   :  { %566 = vmatmul.bf16.gmra.mxu1 %v434_v28  ;;  %615 = vmatmul.bf16.gmra.mxu2 %v434_v28 }
 0x12d   :  { %v542_v29 = vpop.f32.mrf.mxu1 }
 0x133   :  { %v591_v31 = vpop.f32.mrf.mxu2 }
 0x134   :  { %v667_v32 = vadd.f32 %v1179_v30, %v591_v31 }
 0x135   :  { %v544_v33 = vpop.f32.mrf.mxu1 }
 0x136   :  { %683 = vst [vmem:[%s1275_s7] sm:$0xff] %v667_v32  ;;  %v830_v34 = vpack.c.bf16 %v544_v33, %v542_v29 }
 0x138   :  { %831 = vst [vmem:[%s1276_s6] sm:$0xff] %v830_v34  }
 0x139   :  { %v572_v35 = vpop.f32.mrf.mxu3 }
 0x13b   :  { %v593_v36 = vpop.f32.mrf.mxu2 }
 0x13c   :  { %v668_v37 = vadd.f32 %v1179_v30, %v593_v36 }
 0x13d   :  { %v547_v38 = vpop.f32.mrf.mxu1 }
 0x13e   :  { %684 = vst [vmem:[%s1275_s7 + $0x8] sm:$0xff] %v668_v37 }
 0x141   :  { %v574_v39 = vpop.f32.mrf.mxu3 }
 0x142   :  { %v860_v40 = vpack.c.bf16 %v574_v39, %v572_v35 }
 0x143   :  { %v596_v41 = vpop.f32.mrf.mxu2 }
 0x144   :  { %872 = vst [vmem:[%s1276_s6 + $0x30] sm:$0xff] %v860_v40   ;;  %v669_v42 = vadd.f32 %v1179_v30, %v596_v41 }
 0x145   :  { %v549_v43 = vpop.f32.mrf.mxu1 }
 0x146   :  { %685 = vst [vmem:[%s1275_s7 + $0x10] sm:$0xff] %v669_v42  ;;  %v835_v44 = vpack.c.bf16 %v549_v43, %v547_v38 }
 0x148   :  { %867 = vst [vmem:[%s1276_s6 + $0x8] sm:$0xff] %v835_v44  }
 0x149   :  { %v577_v45 = vpop.f32.mrf.mxu3 }
 0x14b   :  { %v598_v46 = vpop.f32.mrf.mxu2 }
 0x14c   :  { %v670_v47 = vadd.f32 %v1179_v30, %v598_v46 }
 0x14d   :  { %v552_v48 = vpop.f32.mrf.mxu1 }
 0x14e   :  { %686 = vst [vmem:[%s1275_s7 + $0x18] sm:$0xff] %v670_v47 }
 0x151   :  { %v579_v49 = vpop.f32.mrf.mxu3 }
 0x152   :  { %v865_v50 = vpack.c.bf16 %v579_v49, %v577_v45 }
 0x153   :  { %v601_v51 = vpop.f32.mrf.mxu2 }
 0x154   :  { %873 = vst [vmem:[%s1276_s6 + $0x38] sm:$0xff] %v865_v50   ;;  %v671_v52 = vadd.f32 %v1179_v30, %v601_v51 }
 0x155   :  { %v554_v53 = vpop.f32.mrf.mxu1 }
 0x156   :  { %687 = vst [vmem:[%s1275_s7 + $0x20] sm:$0xff] %v671_v52  ;;  %v840_v54 = vpack.c.bf16 %v554_v53, %v552_v48 }
 0x158   :  { %868 = vst [vmem:[%s1276_s6 + $0x10] sm:$0xff] %v840_v54  }
 0x159   :  { %v621_v55 = vpop.f32.mrf.mxu3 }
 0x15a   :  { %v679_v56 = vadd.f32 %v1179_v30, %v621_v55 }
 0x15b   :  { %v603_v57 = vpop.f32.mrf.mxu2 }
 0x15c   :  { %695 = vst [vmem:[%s1275_s7 + $0x60] sm:$0xff] %v679_v56  ;;  %v672_v58 = vadd.f32 %v1179_v30, %v603_v57 }
 0x15d   :  { %v557_v59 = vpop.f32.mrf.mxu1 }
 0x15e   :  { %688 = vst [vmem:[%s1275_s7 + $0x28] sm:$0xff] %v672_v58 }
 0x161   :  { %v623_v60 = vpop.f32.mrf.mxu3 }
 0x162   :  { %v680_v61 = vadd.f32 %v1179_v30, %v623_v60 }
 0x163   :  { %v606_v62 = vpop.f32.mrf.mxu2 }
 0x164   :  { %696 = vst [vmem:[%s1275_s7 + $0x68] sm:$0xff] %v680_v61  ;;  %v673_v63 = vadd.f32 %v1179_v30, %v606_v62 }
 0x165   :  { %v559_v0 = vpop.f32.mrf.mxu1 }
 0x166   :  { %689 = vst [vmem:[%s1275_s7 + $0x30] sm:$0xff] %v673_v63  ;;  %v845_v1 = vpack.c.bf16 %v559_v0, %v557_v59 }
 0x168   :  { %869 = vst [vmem:[%s1276_s6 + $0x18] sm:$0xff] %v845_v1  }
 0x169   :  { %v626_v2 = vpop.f32.mrf.mxu3 }
 0x16a   :  { %v681_v3 = vadd.f32 %v1179_v30, %v626_v2 }
 0x16b   :  { %v608_v4 = vpop.f32.mrf.mxu2 }
 0x16c   :  { %697 = vst [vmem:[%s1275_s7 + $0x70] sm:$0xff] %v681_v3  ;;  %v674_v5 = vadd.f32 %v1179_v30, %v608_v4 }
 0x16d   :  { %v562_v6 = vpop.f32.mrf.mxu1 }
 0x16e   :  { %690 = vst [vmem:[%s1275_s7 + $0x38] sm:$0xff] %v674_v5 }
 0x171   :  { %v628_v7 = vpop.f32.mrf.mxu3 }
 0x172   :  { %v682_v8 = vadd.f32 %v1179_v30, %v628_v7 }
 0x173   :  { %v611_v9 = vpop.f32.mrf.mxu2 }
 0x174   :  { %698 = vst [vmem:[%s1275_s7 + $0x78] sm:$0xff] %v682_v8  ;;  %v675_v10 = vadd.f32 %v1179_v30, %v611_v9 }
 0x175   :  { %v564_v11 = vpop.f32.mrf.mxu1 }
 0x176   :  { %691 = vst [vmem:[%s1275_s7 + $0x40] sm:$0xff] %v675_v10  ;;  %v850_v12 = vpack.c.bf16 %v564_v11, %v562_v6 }
 0x178   :  { %870 = vst [vmem:[%s1276_s6 + $0x20] sm:$0xff] %v850_v12  }
 0x17b   :  { %v613_v13 = vpop.f32.mrf.mxu2 }
 0x17c   :  { %v676_v14 = vadd.f32 %v1179_v30, %v613_v13 }
 0x17d   :  { %v567_v15 = vpop.f32.mrf.mxu1 }
 0x17e   :  { %692 = vst [vmem:[%s1275_s7 + $0x48] sm:$0xff] %v676_v14 }
 0x183   :  { %v616_v16 = vpop.f32.mrf.mxu2 }
 0x184   :  { %v677_v17 = vadd.f32 %v1179_v30, %v616_v16 }
 0x185   :  { %v569_v18 = vpop.f32.mrf.mxu1 }
 0x186   :  { %693 = vst [vmem:[%s1275_s7 + $0x50] sm:$0xff] %v677_v17  ;;  %v855_v19 = vpack.c.bf16 %v569_v18, %v567_v15 }
 0x188   :  { %871 = vst [vmem:[%s1276_s6 + $0x28] sm:$0xff] %v855_v19  }
 0x18b   :  { %v618_v20 = vpop.f32.mrf.mxu2 }
 0x18c   :  { %v678_v21 = vadd.f32 %v1179_v30, %v618_v20 }
 0x18e   :  { %694 = vst [vmem:[%s1275_s7 + $0x58] sm:$0xff] %v678_v21 }

// kernel: graphsage_forward.5
= control target key start
LH: loop header
LB: loop body
LE: loop exit
PB: predicated region body
PF: predicated region fallthrough
CT: control target
= control target key end

     0   :  { %v932_v1 = vmov 0   ;;  %s1372_s1 = inlined_call_operand.vmem [shape: bf16[128,128], index: 1, kind: input, shape index: {}]   ;;  %s1373_s3 = inlined_call_operand.vmem [shape: f32[128,1], index: 3, kind: input, shape index: {}]   ;;  %s1374_s0 = inlined_call_operand.vmem [shape: s8[128,128], index: 0, kind: input, shape index: {}]   ;;  %s1375_s4 = inlined_call_operand.vmem [shape: bf16[128,128], index: 4, kind: input, shape index: {}]   ;;  %s1376_s5 = inlined_call_operand.vmem [shape: f32[1,128], index: 5, kind: input, shape index: {}]   ;;  %s1377_s2 = inlined_call_operand.vmem [shape: f32[128,128], index: 2, kind: input, shape index: {}]   ;;  %s1378_s6 = inlined_call_operand.vmem [shape: f32[128,128], index: 6, kind: output, shape index: {}]  }
   0x1   :  { %v838_v0 = vld [vmem:[%s1372_s1 + $0x38] sm:$0xff]  ;;  %864 = vset.pattern.permute.xlu0 %v932_v1  ;;  %v275_v2 = vld [vmem:[%s1373_s3 + $0x40] sm:$0xff]  ;;  %865 = vset.pattern.permute.xlu1 %v932_v1  ;;  %v837_v4 = vld [vmem:[%s1372_s1 + $0x30] sm:$0xff] }
   0x2   :  { %325 = vperm.xlu0 %864, %v275_v2   ;;  %v267_v3 = vld [vmem:[%s1373_s3] sm:$0xff]  ;;  %866 = vset.pattern.permute.xlu2 %v932_v1  ;;  %v836_v5 = vld [vmem:[%s1372_s1 + $0x28] sm:$0xff]  ;;  %v834_v9 = vld [vmem:[%s1372_s1 + $0x18] sm:$0xff] }
   0x3   :  { %167 = vmatpush.bf16.msra.mxu0 %v838_v0  ;;  %847 = vmatpush.bf16.msra.mxu2 %v838_v0  ;;  %v276_v6 = vld [vmem:[%s1373_s3 + $0x48] sm:$0xff]  ;;  %v835_v8 = vld [vmem:[%s1372_s1 + $0x20] sm:$0xff]  ;;  %v269_v10 = vld [vmem:[%s1373_s3 + $0x10] sm:$0xff] }
   0x4   :  { %285 = vperm.xlu1 %865, %v267_v3   ;;  %v268_v7 = vld [vmem:[%s1373_s3 + $0x8] sm:$0xff]  ;;  %v270_v11 = vld [vmem:[%s1373_s3 + $0x18] sm:$0xff]  ;;  %v277_v12 = vld [vmem:[%s1373_s3 + $0x50] sm:$0xff] }
   0x5   :  { %v833_v13 = vld [vmem:[%s1372_s1 + $0x10] sm:$0xff]  ;;  %v43_v14 = vld [vmem:[%s1374_s0] sm:$0xff]  ;;  %335 = vperm.xlu2 %866, %v277_v12   ;;  %v832_v20 = vld [vmem:[%s1372_s1 + $0x8] sm:$0xff] }
   0x6   :  { %v45_v15 = vld [vmem:[%s1374_s0 + $0x10] sm:$0xff]  ;;  %v47_v16 = vunpack.c.0.s8 %v43_v14  ;;  %v48_v17 = vunpack.c.1.s8 %v43_v14  ;;  %v280_v21 = vld [vmem:[%s1373_s3 + $0x68] sm:$0xff]  ;;  %v271_v22 = vld [vmem:[%s1373_s3 + $0x20] sm:$0xff]  ;;  %v49_v34 = vunpack.c.2.s8 %v43_v14  ;;  %v50_v35 = vunpack.c.3.s8 %v43_v14 }
   0x7   :  { %168 = vmatpush.bf16.msra.mxu0 %v837_v4  ;;  %848 = vmatpush.bf16.msra.mxu2 %v837_v4  ;;  %v55_v18 = vunpack.c.0.s8 %v45_v15  ;;  %v56_v19 = vunpack.c.1.s8 %v45_v15  ;;  %v278_v23 = vld [vmem:[%s1373_s3 + $0x58] sm:$0xff]  ;;  %v831_v28 = vld [vmem:[%s1372_s1] sm:$0xff]  ;;  %v281_v31 = vld [vmem:[%s1373_s3 + $0x70] sm:$0xff]  ;;  %v57_v36 = vunpack.c.2.s8 %v45_v15  ;;  %v58_v37 = vunpack.c.3.s8 %v45_v15 }
   0x8   :  { %v63_v24 = vcvt.s32.f32 %v47_v16  ;;  %v64_v25 = vcvt.s32.f32 %v48_v17  ;;  %v282_v32 = vld [vmem:[%s1373_s3 + $0x78] sm:$0xff]  ;;  %v279_v33 = vld [vmem:[%s1373_s3 + $0x60] sm:$0xff]  ;;  %v272_v39 = vld [vmem:[%s1373_s3 + $0x28] sm:$0xff]  ;;  %v65_v40 = vcvt.s32.f32 %v49_v34  ;;  %v66_v41 = vcvt.s32.f32 %v50_v35 }
   0x9   :  { %v71_v26 = vcvt.s32.f32 %v55_v18  ;;  %v72_v27 = vcvt.s32.f32 %v56_v19  ;;  %v274_v38 = vld [vmem:[%s1373_s3 + $0x38] sm:$0xff]  ;;  %v73_v42 = vcvt.s32.f32 %v57_v36  ;;  %v74_v43 = vcvt.s32.f32 %v58_v37  ;;  %v273_v46 = vld [vmem:[%s1373_s3 + $0x30] sm:$0xff]  ;;  %v44_v47 = vld [vmem:[%s1374_s0 + $0x8] sm:$0xff] }
   0xa   :  { %330 = vperm.xlu0 %864, %v276_v6   ;;  %v79_v29 = vpack.c.bf16 %v64_v25, %v63_v24  ;;  %v80_v44 = vpack.c.bf16 %v66_v41, %v65_v40  ;;  %v46_v48 = vld [vmem:[%s1374_s0 + $0x18] sm:$0xff]  ;;  %v51_v49 = vunpack.c.0.s8 %v44_v47  ;;  %v52_v50 = vunpack.c.1.s8 %v44_v47  ;;  %v845_v6 = vld [vmem:[%s1375_s4 + $0x30] sm:$0xff]  ;;  %v839_v12 = vld [vmem:[%s1375_s4] sm:$0xff] }
   0xb   :  { %169 = vmatpush.bf16.msra.mxu0 %v836_v5  ;;  %849 = vmatpush.bf16.msra.mxu2 %v836_v5  ;;  %v83_v30 = vpack.c.bf16 %v72_v27, %v71_v26  ;;  %v84_v45 = vpack.c.bf16 %v74_v43, %v73_v42  ;;  %v59_v51 = vunpack.c.0.s8 %v46_v48  ;;  %v60_v52 = vunpack.c.1.s8 %v46_v48  ;;  %v846_v5 = vld [vmem:[%s1375_s4 + $0x38] sm:$0xff]  ;;  %v379_v17 = vld [vmem:[%s1377_s2] sm:$0xff] }
   0xc   :  { %290 = vperm.xlu1 %865, %v268_v7   ;;  %v67_v53 = vcvt.s32.f32 %v51_v49  ;;  %v68_v54 = vcvt.s32.f32 %v52_v50  ;;  %v53_v59 = vunpack.c.2.s8 %v44_v47  ;;  %v54_v60 = vunpack.c.3.s8 %v44_v47  ;;  %503 = vmatpush.bf16.msra.mxu1 %v846_v5  ;;  %v844_v7 = vld [vmem:[%s1375_s4 + $0x28] sm:$0xff] }
   0xd   :  { %340 = vperm.xlu2 %866, %v278_v23   ;;  %v75_v55 = vcvt.s32.f32 %v59_v51  ;;  %v76_v56 = vcvt.s32.f32 %v60_v52  ;;  %v61_v61 = vunpack.c.2.s8 %v46_v48  ;;  %v62_v62 = vunpack.c.3.s8 %v46_v48  ;;  %855 = vmatpush.bf16.msra.mxu3 %v846_v5  ;;  %v382_v48 = vld [vmem:[%s1377_s2 + $0x18] sm:$0xff] }
   0xe   :  { %v81_v57 = vpack.c.bf16 %v68_v54, %v67_v53  ;;  %v69_v63 = vcvt.s32.f32 %v53_v59  ;;  %v70_v0 = vcvt.s32.f32 %v54_v60  ;;  %v389_v53 = vld [vmem:[%s1377_s2 + $0x50] sm:$0xff] }
   0xf   :  { %170 = vmatpush.bf16.msra.mxu0 %v835_v8  ;;  %850 = vmatpush.bf16.msra.mxu2 %v835_v8  ;;  %v85_v58 = vpack.c.bf16 %v76_v56, %v75_v55  ;;  %v77_v1 = vcvt.s32.f32 %v61_v61  ;;  %v78_v2 = vcvt.s32.f32 %v62_v62  ;;  %v843_v8 = vld [vmem:[%s1375_s4 + $0x20] sm:$0xff] }
  0x10   :  { %v82_v3 = vpack.c.bf16 %v70_v0, %v69_v63  ;;  %504 = vmatpush.bf16.msra.mxu1 %v845_v6 }
  0x11   :  { %v86_v4 = vpack.c.bf16 %v78_v2, %v77_v1  ;;  %856 = vmatpush.bf16.msra.mxu3 %v845_v6  ;;  %v383_v6 = vld [vmem:[%s1377_s2 + $0x20] sm:$0xff] }
  0x12   :  { %295 = vperm.xlu0 %864, %v269_v10   ;;  %v841_v10 = vld [vmem:[%s1375_s4 + $0x10] sm:$0xff] }
  0x13   :  { %171 = vmatpush.bf16.msra.mxu0 %v834_v9  ;;  %851 = vmatpush.bf16.msra.mxu2 %v834_v9  ;;  %v842_v9 = vld [vmem:[%s1375_s4 + $0x18] sm:$0xff] }
  0x14   :  { %300 = vperm.xlu1 %865, %v270_v11   ;;  %505 = vmatpush.bf16.msra.mxu1 %v844_v7  ;;  %v840_v11 = vld [vmem:[%s1375_s4 + $0x8] sm:$0xff] }
  0x15   :  { %345 = vperm.xlu2 %866, %v279_v33   ;;  %857 = vmatpush.bf16.msra.mxu3 %v844_v7 }
  0x17   :  { %172 = vmatpush.bf16.msra.mxu0 %v833_v13  ;;  %852 = vmatpush.bf16.msra.mxu2 %v833_v13 }
  0x18   :  { %506 = vmatpush.bf16.msra.mxu1 %v843_v8 }
  0x19   :  { %858 = vmatpush.bf16.msra.mxu3 %v843_v8 }
  0x1a   :  { %350 = vperm.xlu0 %864, %v280_v21   ;;  %v380_v21 = vld [vmem:[%s1377_s2 + $0x8] sm:$0xff] }
  0x1b   :  { %173 = vmatpush.bf16.msra.mxu0 %v832_v20  ;;  %853 = vmatpush.bf16.msra.mxu2 %v832_v20 }
  0x1c   :  { %305 = vperm.xlu1 %865, %v271_v22   ;;  %507 = vmatpush.bf16.msra.mxu1 %v842_v9 }
  0x1d   :  { %310 = vperm.xlu2 %866, %v272_v39   ;;  %859 = vmatpush.bf16.msra.mxu3 %v842_v9 }
  0x1f   :  { %174 = vmatpush.bf16.msra.mxu0 %v831_v28  ;;  %854 = vmatpush.bf16.msra.mxu2 %v831_v28  ;;  %v387_v28 = vld [vmem:[%s1377_s2 + $0x40] sm:$0xff] }
  0x20   :  { %508 = vmatpush.bf16.msra.mxu1 %v841_v10 }
  0x21   :  { %860 = vmatpush.bf16.msra.mxu3 %v841_v10  ;;  %v384_v10 = vld [vmem:[%s1377_s2 + $0x28] sm:$0xff] }
  0x22   :  { %175 = vmatmul.bf16.vlgmr.msra.gmra.mxu0 %v79_v29  ;;  %195 = vmatmul.bf16.vlgmr.msra.gmra.mxu2 %v83_v30 }
  0x23   :  { %355 = vperm.xlu0 %864, %v281_v31  }
  0x24   :  { %360 = vperm.xlu1 %865, %v282_v32   ;;  %509 = vmatpush.bf16.msra.mxu1 %v840_v11  ;;  %v388_v32 = vld [vmem:[%s1377_s2 + $0x48] sm:$0xff] }
  0x25   :  { %315 = vperm.xlu2 %866, %v273_v46   ;;  %861 = vmatpush.bf16.msra.mxu3 %v840_v11 }
  0x28   :  { %510 = vmatpush.bf16.msra.mxu1 %v839_v12 }
  0x29   :  { %862 = vmatpush.bf16.msra.mxu3 %v839_v12 }
  0x2b   :  { %320 = vperm.xlu0 %864, %v274_v38  }
  0x32   :  { %180 = vmatmul.bf16.gmra.mxu0 %v80_v44  ;;  %200 = vmatmul.bf16.gmra.mxu2 %v84_v45  ;;  %v381_v44 = vld [vmem:[%s1377_s2 + $0x10] sm:$0xff] }
  0x42   :  { %185 = vmatmul.bf16.gmra.mxu0 %v81_v57  ;;  %205 = vmatmul.bf16.gmra.mxu2 %v85_v58  ;;  %v390_v58 = vld [vmem:[%s1377_s2 + $0x58] sm:$0xff] }
  0x52   :  { %190 = vmatmul.bf16.gmra.mxu0 %v82_v3  ;;  %210 = vmatmul.bf16.gmra.mxu2 %v86_v4 }
  0x5f   :  { %v336_v25 = vpop.permute.xlu2 %335 }
  0x67   :  { %v341_v41 = vpop.permute.xlu2 %340 }
  0x6f   :  { %v346_v56 = vpop.permute.xlu2 %345 }
  0x74   :  { %v326_v14 = vpop.permute.xlu0 %325 }
  0x76   :  { %v286_v13 = vpop.permute.xlu1 %285 }
  0x77   :  { %v311_v8 = vpop.permute.xlu2 %310 }
  0x7c   :  { %v331_v24 = vpop.permute.xlu0 %330 }
  0x7e   :  { %v291_v19 = vpop.permute.xlu1 %290 }
  0x84   :  { %v296_v40 = vpop.permute.xlu0 %295 }
  0x86   :  { %v301_v46 = vpop.permute.xlu1 %300 }
  0x8c   :  { %v351_v2 = vpop.permute.xlu0 %350 }
  0x8e   :  { %v306_v3 = vpop.permute.xlu1 %305 }
  0x9f   :  { %v176_v15 = vpop.f32.mrf.mxu0 }
  0xa0   :  { %v363_v16 = vmul.f32 %v286_v13, %v176_v15  ;;  %v391_v15 = vld [vmem:[%s1377_s2 + $0x60] sm:$0xff] }
  0xa2   :  { %v395_v22 = vadd.f32 %v379_v17, %v363_v16 }
  0xa4   :  { %v411_v29 = vmax.f32 %v395_v22, 0.0 }
  0xa5   :  { %v196_v18 = vpop.f32.mrf.mxu2 }
  0xa6   :  { %v371_v26 = vmul.f32 %v326_v14, %v196_v18  ;;  %v356_v18 = vpop.permute.xlu0 %355 }
  0xa7   :  { %v178_v20 = vpop.f32.mrf.mxu0 }
  0xa8   :  { %v364_v23 = vmul.f32 %v291_v19, %v178_v20  ;;  %v403_v33 = vadd.f32 %v387_v28, %v371_v26  ;;  %v392_v20 = vld [vmem:[%s1377_s2 + $0x68] sm:$0xff]  ;;  %v316_v28 = vpop.permute.xlu2 %315 }
  0xaa   :  { %v396_v27 = vadd.f32 %v380_v21, %v364_v23  ;;  %v419_v38 = vmax.f32 %v403_v33, 0.0 }
  0xac   :  { %v412_v30 = vmax.f32 %v396_v27, 0.0 }
  0xad   :  { %v198_v31 = vpop.f32.mrf.mxu2 }
  0xae   :  { %v372_v34 = vmul.f32 %v331_v24, %v198_v31  ;;  %v427_v35 = vpack.c.bf16 %v412_v30, %v411_v29  ;;  %v385_v31 = vld [vmem:[%s1377_s2 + $0x30] sm:$0xff]  ;;  %v321_v33 = vpop.permute.xlu0 %320 }
  0xaf   :  { %v181_v36 = vpop.f32.mrf.mxu0 }
  0xb0   :  { %v404_v37 = vadd.f32 %v388_v32, %v372_v34  ;;  %511 = vmatmul.bf16.vlgmr.msra.gmra.mxu1 %v427_v35  ;;  %v365_v42 = vmul.f32 %v296_v40, %v181_v36  ;;  %v386_v35 = vld [vmem:[%s1377_s2 + $0x38] sm:$0xff]  ;;  %v393_v40 = vld [vmem:[%s1377_s2 + $0x70] sm:$0xff] }
  0xb2   :  { %v420_v39 = vmax.f32 %v404_v37, 0.0  ;;  %v397_v49 = vadd.f32 %v381_v44, %v365_v42 }
  0xb4   :  { %v431_v43 = vpack.c.bf16 %v420_v39, %v419_v38  ;;  %v413_v54 = vmax.f32 %v397_v49, 0.0 }
  0xb5   :  { %v201_v45 = vpop.f32.mrf.mxu2 }
  0xb6   :  { %531 = vmatmul.bf16.vlgmr.msra.gmra.mxu3 %v431_v43  ;;  %v373_v51 = vmul.f32 %v336_v25, %v201_v45  ;;  %v361_v43 = vpop.permute.xlu1 %360  ;;  %v394_v45 = vld [vmem:[%s1377_s2 + $0x78] sm:$0xff] }
  0xb7   :  { %v183_v47 = vpop.f32.mrf.mxu0 }
  0xb8   :  { %v366_v50 = vmul.f32 %v301_v46, %v183_v47  ;;  %v405_v59 = vadd.f32 %v389_v53, %v373_v51  ;;  %v552_v53 = vlaneseq }
  0xba   :  { %v398_v52 = vadd.f32 %v382_v48, %v366_v50  ;;  %v421_v0 = vmax.f32 %v405_v59, 0.0 }
  0xbc   :  { %v414_v55 = vmax.f32 %v398_v52, 0.0 }
  0xbd   :  { %v203_v57 = vpop.f32.mrf.mxu2 }
  0xbe   :  { %v374_v60 = vmul.f32 %v341_v41, %v203_v57  ;;  %v428_v61 = vpack.c.bf16 %v414_v55, %v413_v54  ;;  %v1124_v54 = vand.u32 127, %v552_v53  ;;  %v1129_v55 = vld [vmem:[%s1376_s5] ss:$0 sm:$0xff] }
  0xbf   :  { %v186_v62 = vpop.f32.mrf.mxu0 }
  0xc0   :  { %v406_v63 = vadd.f32 %v390_v58, %v374_v60  ;;  %516 = vmatmul.bf16.gmra.mxu1 %v428_v61  ;;  %v367_v4 = vmul.f32 %v306_v3, %v186_v62  ;;  %vm554_vm0 = vcmp.lt.s32.totalorder %v1124_v54, 4 }
  0xc2   :  { %v422_v1 = vmax.f32 %v406_v63, 0.0  ;;  %v399_v11 = vadd.f32 %v383_v6, %v367_v4 }
  0xc4   :  { %v432_v5 = vpack.c.bf16 %v422_v1, %v421_v0  ;;  %v415_v16 = vmax.f32 %v399_v11, 0.0 }
  0xc5   :  { %v206_v7 = vpop.f32.mrf.mxu2 }
  0xc6   :  { %536 = vmatmul.bf16.gmra.mxu3 %v432_v5  ;;  %v375_v13 = vmul.f32 %v346_v56, %v206_v7 }
  0xc7   :  { %v188_v9 = vpop.f32.mrf.mxu0 }
  0xc8   :  { %v368_v12 = vmul.f32 %v311_v8, %v188_v9  ;;  %v407_v21 = vadd.f32 %v391_v15, %v375_v13 }
  0xca   :  { %v400_v14 = vadd.f32 %v384_v10, %v368_v12  ;;  %v423_v26 = vmax.f32 %v407_v21, 0.0 }
  0xcc   :  { %v416_v17 = vmax.f32 %v400_v14, 0.0 }
  0xcd   :  { %v208_v19 = vpop.f32.mrf.mxu2 }
  0xce   :  { %v376_v22 = vmul.f32 %v351_v2, %v208_v19  ;;  %v429_v23 = vpack.c.bf16 %v416_v17, %v415_v16 }
  0xcf   :  { %v191_v24 = vpop.f32.mrf.mxu0 }
  0xd0   :  { %v408_v25 = vadd.f32 %v392_v20, %v376_v22  ;;  %521 = vmatmul.bf16.gmra.mxu1 %v429_v23  ;;  %v369_v29 = vmul.f32 %v316_v28, %v191_v24 }
  0xd2   :  { %v424_v27 = vmax.f32 %v408_v25, 0.0  ;;  %v401_v36 = vadd.f32 %v385_v31, %v369_v29 }
  0xd4   :  { %v433_v30 = vpack.c.bf16 %v424_v27, %v423_v26  ;;  %v417_v41 = vmax.f32 %v401_v36, 0.0 }
  0xd5   :  { %v211_v32 = vpop.f32.mrf.mxu2 }
  0xd6   :  { %541 = vmatmul.bf16.gmra.mxu3 %v433_v30  ;;  %v377_v38 = vmul.f32 %v356_v18, %v211_v32 }
  0xd7   :  { %v193_v34 = vpop.f32.mrf.mxu0 }
  0xd8   :  { %v370_v37 = vmul.f32 %v321_v33, %v193_v34  ;;  %v409_v46 = vadd.f32 %v393_v40, %v377_v38 }
  0xda   :  { %v402_v39 = vadd.f32 %v386_v35, %v370_v37  ;;  %v425_v50 = vmax.f32 %v409_v46, 0.0 }
  0xdc   :  { %v418_v42 = vmax.f32 %v402_v39, 0.0 }
  0xdd   :  { %v213_v44 = vpop.f32.mrf.mxu2 }
  0xde   :  { %v378_v47 = vmul.f32 %v361_v43, %v213_v44  ;;  %v430_v48 = vpack.c.bf16 %v418_v42, %v417_v41 }
  0xe0   :  { %v410_v49 = vadd.f32 %v394_v45, %v378_v47  ;;  %526 = vmatmul.bf16.gmra.mxu1 %v430_v48 }
  0xe2   :  { %v426_v51 = vmax.f32 %v410_v49, 0.0 }
  0xe4   :  { %v434_v52 = vpack.c.bf16 %v426_v51, %v425_v50 }
  0xe6   :  { %546 = vmatmul.bf16.gmra.mxu3 %v434_v52 }
 0x12d   :  { %v512_v56 = vpop.f32.mrf.mxu1 }
 0x12e   :  { %v513_v57 = vadd.f32 %v1129_v55, %v512_v56 }
 0x130   :  { %v1135_v58 = vsel %vm554_vm0, %v513_v57, -1e+30 }
 0x131   :  { %571 = vmax.xlane.f32.xlu1 %v1135_v58 }
 0x135   :  { %v514_v59 = vpop.f32.mrf.mxu1 }
 0x136   :  { %v515_v60 = vadd.f32 %v1129_v55, %v514_v59 }
 0x138   :  { %v1141_v61 = vsel %vm554_vm0, %v515_v60, -1e+30 }
 0x139   :  { %v532_v62 = vpop.f32.mrf.mxu3  ;;  %573 = vmax.xlane.f32.xlu2 %v1141_v61 }
 0x13a   :  { %v533_v63 = vadd.f32 %v1129_v55, %v532_v62 }
 0x13c   :  { %v1148_v2 = vsel %vm554_vm0, %v533_v63, -1e+30 }
 0x13d   :  { %v517_v0 = vpop.f32.mrf.mxu1 }
 0x13e   :  { %v518_v1 = vadd.f32 %v1129_v55, %v517_v0 }
 0x140   :  { %v1152_v3 = vsel %vm554_vm0, %v518_v1, -1e+30 }
 0x141   :  { %v534_v4 = vpop.f32.mrf.mxu3  ;;  %587 = vmax.xlane.f32.xlu2 %v1148_v2  ;;  %575 = vmax.xlane.f32.xlu0 %v1152_v3 }
 0x142   :  { %v535_v5 = vadd.f32 %v1129_v55, %v534_v4 }
 0x144   :  { %v1164_v9 = vsel %vm554_vm0, %v535_v5, -1e+30 }
 0x145   :  { %v519_v6 = vpop.f32.mrf.mxu1 }
 0x146   :  { %v520_v7 = vadd.f32 %v1129_v55, %v519_v6 }
 0x148   :  { %v1160_v8 = vsel %vm554_vm0, %v520_v7, -1e+30 }
 0x149   :  { %v537_v10 = vpop.f32.mrf.mxu3  ;;  %577 = vmax.xlane.f32.xlu2 %v1160_v8  ;;  %589 = vmax.xlane.f32.xlu0 %v1164_v9 }
 0x14a   :  { %v538_v11 = vadd.f32 %v1129_v55, %v537_v10 }
 0x14c   :  { %v1171_v12 = vsel %vm554_vm0, %v538_v11, -1e+30 }
 0x14d   :  { %591 = vmax.xlane.f32.xlu1 %v1171_v12  ;;  %v522_v13 = vpop.f32.mrf.mxu1 }
 0x14e   :  { %v523_v14 = vadd.f32 %v1129_v55, %v522_v13 }
 0x150   :  { %v1182_v18 = vsel %vm554_vm0, %v523_v14, -1e+30 }
 0x151   :  { %v539_v15 = vpop.f32.mrf.mxu3 }
 0x152   :  { %v540_v16 = vadd.f32 %v1129_v55, %v539_v15 }
 0x154   :  { %v1178_v17 = vsel %vm554_vm0, %v540_v16, -1e+30 }
 0x155   :  { %593 = vmax.xlane.f32.xlu2 %v1178_v17  ;;  %v524_v19 = vpop.f32.mrf.mxu1  ;;  %579 = vmax.xlane.f32.xlu1 %v1182_v18 }
 0x156   :  { %v525_v20 = vadd.f32 %v1129_v55, %v524_v19 }
 0x158   :  { %v1194_v24 = vsel %vm554_vm0, %v525_v20, -1e+30 }
 0x159   :  { %v542_v21 = vpop.f32.mrf.mxu3 }
 0x15a   :  { %v543_v22 = vadd.f32 %v1129_v55, %v542_v21 }
 0x15c   :  { %v1190_v23 = vsel %vm554_vm0, %v543_v22, -1e+30 }
 0x15d   :  { %595 = vmax.xlane.f32.xlu0 %v1190_v23  ;;  %581 = vmax.xlane.f32.xlu2 %v1194_v24  ;;  %v527_v25 = vpop.f32.mrf.mxu1 }
 0x15e   :  { %v528_v26 = vadd.f32 %v1129_v55, %v527_v25 }
 0x160   :  { %v1201_v28 = vsel %vm554_vm0, %v528_v26, -1e+30 }
 0x161   :  { %v544_v27 = vpop.f32.mrf.mxu3 }
 0x162   :  { %v545_v34 = vadd.f32 %v1129_v55, %v544_v27 }
 0x164   :  { %v1219_v36 = vsel %vm554_vm0, %v545_v34, -1e+30 }
 0x165   :  { %v529_v29 = vpop.f32.mrf.mxu1  ;;  %583 = vmax.xlane.f32.xlu0 %v1201_v28 }
 0x166   :  { %v530_v30 = vadd.f32 %v1129_v55, %v529_v29 }
 0x168   :  { %v1207_v31 = vsel %vm554_vm0, %v530_v30, -1e+30 }
 0x169   :  { %v547_v32 = vpop.f32.mrf.mxu3  ;;  %585 = vmax.xlane.f32.xlu1 %v1207_v31 }
 0x16a   :  { %v548_v33 = vadd.f32 %v1129_v55, %v547_v32 }
 0x16c   :  { %v1214_v35 = vsel %vm554_vm0, %v548_v33, -1e+30 }
 0x16d   :  { %599 = vmax.xlane.f32.xlu2 %v1214_v35 }
 0x171   :  { %v549_v37 = vpop.f32.mrf.mxu3  ;;  %597 = vmax.xlane.f32.xlu1 %v1219_v36 }
 0x172   :  { %v550_v38 = vadd.f32 %v1129_v55, %v549_v37 }
 0x174   :  { %v1225_v39 = vsel %vm554_vm0, %v550_v38, -1e+30 }
 0x175   :  { %601 = vmax.xlane.f32.xlu0 %v1225_v39 }
 0x1a4   :  { %v1228_v40 = vpop.xlane.xlu1 %571 }
 0x1a5   :  { %v603_v41 = vsub.f32 %v1135_v58, %v1228_v40 }
 0x1a7   :  { %v619_v42 = vmul.f32 1.442695, %v603_v41 }
 0x1a9   :  { %868 = vpow2.f32 %v619_v42 }
 0x1ac   :  { %v1232_v43 = vpop.xlane.xlu2 %573 }
 0x1ad   :  { %v604_v44 = vsub.f32 %v1141_v61, %v1232_v43 }
 0x1af   :  { %v869_v45 = vpop.eup %868  ;;  %v621_v46 = vmul.f32 1.442695, %v604_v44 }
 0x1b0   :  { %651 = vadd.xlane.f32.xlu1 %v869_v45 }
 0x1b1   :  { %870 = vpow2.f32 %v621_v46 }
 0x1b4   :  { %v1236_v47 = vpop.xlane.xlu2 %587  ;;  %v1238_v48 = vpop.xlane.xlu0 %575 }
 0x1b5   :  { %v611_v49 = vsub.f32 %v1148_v2, %v1236_v47  ;;  %v605_v52 = vsub.f32 %v1152_v3, %v1238_v48 }
 0x1b7   :  { %v871_v50 = vpop.eup %870  ;;  %v635_v51 = vmul.f32 1.442695, %v611_v49  ;;  %v623_v54 = vmul.f32 1.442695, %v605_v52 }
 0x1b8   :  { %653 = vadd.xlane.f32.xlu2 %v871_v50 }
 0x1b9   :  { %872 = vpow2.f32 %v635_v51 }
 0x1ba   :  { %874 = vpow2.f32 %v623_v54 }
 0x1bc   :  { %v1244_v53 = vpop.xlane.xlu0 %589  ;;  %v1248_v57 = vpop.xlane.xlu2 %577 }
 0x1bd   :  { %v612_v55 = vsub.f32 %v1164_v9, %v1244_v53  ;;  %v606_v63 = vsub.f32 %v1160_v8, %v1248_v57 }
 0x1bf   :  { %v873_v56 = vpop.eup %872  ;;  %v637_v59 = vmul.f32 1.442695, %v612_v55  ;;  %v625_v1 = vmul.f32 1.442695, %v606_v63 }
 0x1c0   :  { %v1250_v60 = vpop.xlane.xlu1 %591  ;;  %667 = vadd.xlane.f32.xlu0 %v873_v56  ;;  %v875_v4 = vpop.eup %874 }
 0x1c1   :  { %v613_v62 = vsub.f32 %v1171_v12, %v1250_v60  ;;  %876 = vpow2.f32 %v637_v59 }
 0x1c3   :  { %v639_v0 = vmul.f32 1.442695, %v613_v62 }
 0x1c5   :  { %878 = vpow2.f32 %v639_v0 }
 0x1c6   :  { %880 = vpow2.f32 %v625_v1 }
 0x1c7   :  { %v877_v5 = vpop.eup %876 }
 0x1c8   :  { %v1256_v6 = vpop.xlane.xlu2 %593  ;;  %v1258_v7 = vpop.xlane.xlu1 %579  ;;  %655 = vadd.xlane.f32.xlu0 %v875_v4  ;;  %669 = vadd.xlane.f32.xlu1 %v877_v5 }
 0x1c9   :  { %v614_v10 = vsub.f32 %v1178_v17, %v1256_v6  ;;  %v607_v11 = vsub.f32 %v1182_v18, %v1258_v7 }
 0x1cb   :  { %v879_v13 = vpop.eup %878  ;;  %v641_v14 = vmul.f32 1.442695, %v614_v10  ;;  %v627_v15 = vmul.f32 1.442695, %v607_v11 }
 0x1cc   :  { %671 = vadd.xlane.f32.xlu2 %v879_v13  ;;  %v881_v16 = vpop.eup %880 }
 0x1cd   :  { %882 = vpow2.f32 %v641_v14 }
 0x1ce   :  { %884 = vpow2.f32 %v627_v15 }
 0x1d0   :  { %v1264_v19 = vpop.xlane.xlu0 %595  ;;  %v1266_v20 = vpop.xlane.xlu2 %581  ;;  %657 = vadd.xlane.f32.xlu1 %v881_v16 }
 0x1d1   :  { %v615_v21 = vsub.f32 %v1190_v23, %v1264_v19  ;;  %v608_v22 = vsub.f32 %v1194_v24, %v1266_v20 }
 0x1d3   :  { %v883_v25 = vpop.eup %882  ;;  %v643_v26 = vmul.f32 1.442695, %v615_v21  ;;  %v629_v27 = vmul.f32 1.442695, %v608_v22 }
 0x1d4   :  { %v885_v29 = vpop.eup %884  ;;  %673 = vadd.xlane.f32.xlu0 %v883_v25 }
 0x1d5   :  { %886 = vpow2.f32 %v643_v26  ;;  %659 = vadd.xlane.f32.xlu2 %v885_v29 }
 0x1d6   :  { %888 = vpow2.f32 %v629_v27 }
 0x1d8   :  { %v1272_v30 = vpop.xlane.xlu0 %583 }
 0x1d9   :  { %v609_v32 = vsub.f32 %v1201_v28, %v1272_v30 }
 0x1db   :  { %v887_v33 = vpop.eup %886  ;;  %v631_v34 = vmul.f32 1.442695, %v609_v32 }
 0x1dc   :  { %v889_v37 = vpop.eup %888  ;;  %675 = vadd.xlane.f32.xlu1 %v887_v33  ;;  %v1276_v38 = vpop.xlane.xlu1 %585 }
 0x1dd   :  { %890 = vpow2.f32 %v631_v34  ;;  %v610_v41 = vsub.f32 %v1207_v31, %v1276_v38  ;;  %661 = vadd.xlane.f32.xlu0 %v889_v37 }
 0x1df   :  { %v633_v42 = vmul.f32 1.442695, %v610_v41 }
 0x1e0   :  { %v1280_v44 = vpop.xlane.xlu2 %599 }
 0x1e1   :  { %892 = vpow2.f32 %v633_v42  ;;  %v617_v45 = vsub.f32 %v1214_v35, %v1280_v44 }
 0x1e3   :  { %v891_v46 = vpop.eup %890  ;;  %v647_v49 = vmul.f32 1.442695, %v617_v45 }
 0x1e4   :  { %v1284_v50 = vpop.xlane.xlu1 %597  ;;  %663 = vadd.xlane.f32.xlu1 %v891_v46 }
 0x1e5   :  { %894 = vpow2.f32 %v647_v49  ;;  %v616_v51 = vsub.f32 %v1219_v36, %v1284_v50 }
 0x1e7   :  { %v893_v52 = vpop.eup %892  ;;  %v645_v54 = vmul.f32 1.442695, %v616_v51 }
 0x1e8   :  { %665 = vadd.xlane.f32.xlu2 %v893_v52  ;;  %v1288_v55 = vpop.xlane.xlu0 %601 }
 0x1e9   :  { %896 = vpow2.f32 %v645_v54  ;;  %v618_v56 = vsub.f32 %v1225_v39, %v1288_v55 }
 0x1eb   :  { %v895_v59 = vpop.eup %894  ;;  %v649_v62 = vmul.f32 1.442695, %v618_v56 }
 0x1ec   :  { %679 = vadd.xlane.f32.xlu0 %v895_v59 }
 0x1ed   :  { %898 = vpow2.f32 %v649_v62 }
 0x1ef   :  { %v897_v63 = vpop.eup %896 }
 0x1f0   :  { %677 = vadd.xlane.f32.xlu2 %v897_v63 }
 0x1f3   :  { %v899_v0 = vpop.eup %898 }
 0x1f4   :  { %681 = vadd.xlane.f32.xlu1 %v899_v0 }
 0x223   :  { %v652_v1 = vpop.xlane.xlu1 %651 }
 0x224   :  { %900 = vlog2.f32 %v652_v1 }
 0x22a   :  { %v901_v4 = vpop.eup %900 }
 0x22b   :  { %v684_v5 = vmul.f32 0.6931472, %v901_v4  ;;  %v654_v10 = vpop.xlane.xlu2 %653 }
 0x22c   :  { %902 = vlog2.f32 %v654_v10 }
 0x22d   :  { %v715_v11 = vadd.f32 %v684_v5, %v1228_v40 }
 0x22f   :  { %v731_v13 = vsub.f32 %v1135_v58, %v715_v11 }
 0x231   :  { %747 = vst [vmem:[%s1378_s6] sm:$0xff] %v731_v13 }
 0x232   :  { %v903_v14 = vpop.eup %902 }
 0x233   :  { %v686_v15 = vmul.f32 0.6931472, %v903_v14  ;;  %v668_v16 = vpop.xlane.xlu0 %667 }
 0x234   :  { %904 = vlog2.f32 %v668_v16 }
 0x235   :  { %v716_v21 = vadd.f32 %v686_v15, %v1232_v43 }
 0x237   :  { %v732_v22 = vsub.f32 %v1141_v61, %v716_v21 }
 0x239   :  { %748 = vst [vmem:[%s1378_s6 + $0x8] sm:$0xff] %v732_v22 }
 0x23a   :  { %v905_v25 = vpop.eup %904 }
 0x23b   :  { %v700_v40 = vmul.f32 0.6931472, %v905_v25  ;;  %v656_v26 = vpop.xlane.xlu0 %655  ;;  %v670_v58 = vpop.xlane.xlu1 %669 }
 0x23c   :  { %906 = vlog2.f32 %v656_v26 }
 0x23d   :  { %v723_v27 = vadd.f32 %v700_v40, %v1236_v47  ;;  %908 = vlog2.f32 %v670_v58 }
 0x23f   :  { %v739_v29 = vsub.f32 %v1148_v2, %v723_v27  ;;  %v672_v32 = vpop.xlane.xlu2 %671 }
 0x240   :  { %910 = vlog2.f32 %v672_v32 }
 0x241   :  { %755 = vst [vmem:[%s1378_s6 + $0x40] sm:$0xff] %v739_v29 }
 0x242   :  { %v907_v61 = vpop.eup %906 }
 0x243   :  { %v909_v43 = vpop.eup %908  ;;  %v688_v33 = vmul.f32 0.6931472, %v907_v61  ;;  %v658_v37 = vpop.xlane.xlu1 %657 }
 0x244   :  { %v702_v34 = vmul.f32 0.6931472, %v909_v43  ;;  %912 = vlog2.f32 %v658_v37 }
 0x245   :  { %v717_v41 = vadd.f32 %v688_v33, %v1238_v48 }
 0x246   :  { %v911_v42 = vpop.eup %910  ;;  %v724_v47 = vadd.f32 %v702_v34, %v1244_v53 }
 0x247   :  { %v733_v45 = vsub.f32 %v1152_v3, %v717_v41  ;;  %v704_v2 = vmul.f32 0.6931472, %v911_v42  ;;  %v674_v46 = vpop.xlane.xlu0 %673 }
 0x248   :  { %v740_v49 = vsub.f32 %v1164_v9, %v724_v47  ;;  %v660_v51 = vpop.xlane.xlu2 %659  ;;  %914 = vlog2.f32 %v674_v46 }
 0x249   :  { %749 = vst [vmem:[%s1378_s6 + $0x10] sm:$0xff] %v733_v45  ;;  %v725_v52 = vadd.f32 %v704_v2, %v1250_v60  ;;  %916 = vlog2.f32 %v660_v51 }
 0x24a   :  { %756 = vst [vmem:[%s1378_s6 + $0x48] sm:$0xff] %v740_v49  ;;  %v913_v48 = vpop.eup %912 }
 0x24b   :  { %v741_v3 = vsub.f32 %v1171_v12, %v725_v52  ;;  %v690_v53 = vmul.f32 0.6931472, %v913_v48 }
 0x24d   :  { %757 = vst [vmem:[%s1378_s6 + $0x50] sm:$0xff] %v741_v3  ;;  %v718_v54 = vadd.f32 %v690_v53, %v1248_v57 }
 0x24e   :  { %v915_v9 = vpop.eup %914 }
 0x24f   :  { %v917_v56 = vpop.eup %916  ;;  %v706_v59 = vmul.f32 0.6931472, %v915_v9  ;;  %v676_v62 = vpop.xlane.xlu1 %675  ;;  %v734_v60 = vsub.f32 %v1160_v8, %v718_v54 }
 0x250   :  { %v692_v63 = vmul.f32 0.6931472, %v917_v56  ;;  %918 = vlog2.f32 %v676_v62  ;;  %v662_v0 = vpop.xlane.xlu0 %661 }
 0x251   :  { %v726_v1 = vadd.f32 %v706_v59, %v1256_v6  ;;  %920 = vlog2.f32 %v662_v0  ;;  %750 = vst [vmem:[%s1378_s6 + $0x18] sm:$0xff] %v734_v60 }
 0x252   :  { %v719_v12 = vadd.f32 %v692_v63, %v1258_v7 }
 0x253   :  { %v742_v4 = vsub.f32 %v1178_v17, %v726_v1 }
 0x254   :  { %v735_v57 = vsub.f32 %v1182_v18, %v719_v12 }
 0x255   :  { %758 = vst [vmem:[%s1378_s6 + $0x58] sm:$0xff] %v742_v4 }
 0x256   :  { %v919_v8 = vpop.eup %918  ;;  %751 = vst [vmem:[%s1378_s6 + $0x20] sm:$0xff] %v735_v57 }
 0x257   :  { %v921_v6 = vpop.eup %920  ;;  %v708_v5 = vmul.f32 0.6931472, %v919_v8  ;;  %v664_v10 = vpop.xlane.xlu1 %663 }
 0x258   :  { %v694_v11 = vmul.f32 0.6931472, %v921_v6  ;;  %922 = vlog2.f32 %v664_v10 }
 0x259   :  { %v727_v7 = vadd.f32 %v708_v5, %v1264_v19 }
 0x25a   :  { %v720_v17 = vadd.f32 %v694_v11, %v1266_v20 }
 0x25b   :  { %v743_v18 = vsub.f32 %v1190_v23, %v727_v7  ;;  %v666_v13 = vpop.xlane.xlu2 %665 }
 0x25c   :  { %v736_v14 = vsub.f32 %v1194_v24, %v720_v17  ;;  %924 = vlog2.f32 %v666_v13 }
 0x25d   :  { %759 = vst [vmem:[%s1378_s6 + $0x60] sm:$0xff] %v743_v18 }
 0x25e   :  { %v923_v15 = vpop.eup %922  ;;  %752 = vst [vmem:[%s1378_s6 + $0x28] sm:$0xff] %v736_v14 }
 0x25f   :  { %v696_v16 = vmul.f32 0.6931472, %v923_v15  ;;  %v680_v21 = vpop.xlane.xlu0 %679 }
 0x260   :  { %926 = vlog2.f32 %v680_v21 }
 0x261   :  { %v721_v19 = vadd.f32 %v696_v16, %v1272_v30 }
 0x262   :  { %v925_v20 = vpop.eup %924 }
 0x263   :  { %v737_v23 = vsub.f32 %v1201_v28, %v721_v19  ;;  %v698_v22 = vmul.f32 0.6931472, %v925_v20  ;;  %v678_v24 = vpop.xlane.xlu2 %677 }
 0x264   :  { %928 = vlog2.f32 %v678_v24 }
 0x265   :  { %753 = vst [vmem:[%s1378_s6 + $0x30] sm:$0xff] %v737_v23  ;;  %v722_v25 = vadd.f32 %v698_v22, %v1276_v38 }
 0x266   :  { %v927_v40 = vpop.eup %926 }
 0x267   :  { %v738_v26 = vsub.f32 %v1207_v31, %v722_v25  ;;  %v712_v58 = vmul.f32 0.6931472, %v927_v40  ;;  %v682_v27 = vpop.xlane.xlu1 %681 }
 0x268   :  { %930 = vlog2.f32 %v682_v27 }
 0x269   :  { %754 = vst [vmem:[%s1378_s6 + $0x38] sm:$0xff] %v738_v26  ;;  %v729_v28 = vadd.f32 %v712_v58, %v1280_v44 }
 0x26a   :  { %v929_v30 = vpop.eup %928 }
 0x26b   :  { %v745_v29 = vsub.f32 %v1214_v35, %v729_v28  ;;  %v710_v32 = vmul.f32 0.6931472, %v929_v30 }
 0x26d   :  { %761 = vst [vmem:[%s1378_s6 + $0x70] sm:$0xff] %v745_v29  ;;  %v728_v38 = vadd.f32 %v710_v32, %v1284_v50 }
 0x26e   :  { %v931_v31 = vpop.eup %930 }
 0x26f   :  { %v744_v61 = vsub.f32 %v1219_v36, %v728_v38  ;;  %v714_v43 = vmul.f32 0.6931472, %v931_v31 }
 0x271   :  { %760 = vst [vmem:[%s1378_s6 + $0x68] sm:$0xff] %v744_v61  ;;  %v730_v44 = vadd.f32 %v714_v43, %v1288_v55 }
 0x273   :  { %v746_v33 = vsub.f32 %v1225_v39, %v730_v44 }
 0x275   :  { %762 = vst [vmem:[%s1378_s6 + $0x78] sm:$0xff] %v746_v33 }

</bundles_post_ra>
